<compile_context>
chip_gen: v5e
topology: v5e:2x2
jax: 0.10.0
libtpu: 0.0.40
codegen_flags: <defaults>
</compile_context>

<pallas_src>
import functools

import jax
import jax.numpy as jnp
from jax.experimental import pallas as pl
from jax.experimental.pallas import tpu as pltpu

DTYPE = jnp.bfloat16  # TPU analog of torch.float16


# ----------------------------- Pallas kernel ------------------------------ #
def _stacked_drnn_kernel(x_ref, wx_ref, u_ref, b_ref, out_ref, act_scr, *,
                         rates, seq_len, batch, hidden):
    """All dilated LSTM layers in one invocation (no grid).

    x_ref   : (seq_len*B, H)      bf16  time-major input, flattened (t*B + b)
    wx_ref  : (n_layers, H, 4H)   bf16  input weights, gates (i,f,o,g);
                                        g columns pre-scaled by 2
    u_ref   : (n_layers, H, 4H)   bf16  recurrent weights, same packing
    b_ref   : (n_layers, 1, 4H)   f32   bias (g slice pre-scaled by 2)
    out_ref : (seq_len*B, H)      bf16
    act_scr : (Lmax*B, H)         bf16  resident slab holding each intermediate
                                        layer's output (next layer's input)
    """
    H = hidden
    B = batch
    T = seq_len
    TB = T * B
    n_layers = len(rates)
    slab_rows = act_scr.shape[0]

    # Zero the time-padding tail once; it covers every layer (stores to the
    # slab below never touch rows >= TB).
    if slab_rows > TB:
        act_scr[TB:, :] = jnp.zeros((slab_rows - TB, H), act_scr.dtype)

    for l, rate in enumerate(rates):
        rB = rate * B                            # dilated "batch" of this layer
        pad = (rate - T % rate) % rate
        L = T + pad
        n_chunks = L // rate
        last = (l == n_layers - 1)

        # ---- Batched input projection: one MXU matmul over the whole layer
        # input (L*B rows), bias folded in with a single add. ----
        if l == 0:
            if pad == 0:
                x_l = x_ref[...]
            else:
                act_scr[:TB, :] = x_ref[...]
                x_l = act_scr[:L * B, :]
        else:
            x_l = act_scr[:L * B, :]
        xproj = jnp.dot(x_l, wx_ref[l], preferred_element_type=jnp.float32)
        xproj = xproj + jnp.broadcast_to(b_ref[l], xproj.shape)

        u = u_ref[l]                                    # (H, 4H) bf16

        c = jnp.zeros((rB, H), dtype=jnp.float32)       # f32 cell state (vregs)
        h_bf = None                                     # bf16 hidden (vregs)

        # ---- Fully unrolled dilated recurrence; only h @ U is on the chain.
        for i in range(n_chunks):
            lo = i * rB
            hi = lo + rB
            gates = xproj[lo:hi]                        # (rB, 4H) f32
            if i > 0:                                   # chunk 0: h == 0
                gates = gates + jnp.dot(h_bf, u,
                                        preferred_element_type=jnp.float32)

            # One full-width sigmoid over all 4H lanes; tanh(g) recovered as
            # 2*sigmoid(2g) - 1 (g columns / g bias pre-scaled by 2 at init).
            s = jax.nn.sigmoid(gates)
            gi = s[:, :H]
            gf = s[:, H:2 * H]
            go = s[:, 2 * H:3 * H]
            gg = 2.0 * s[:, 3 * H:] - 1.0

            c = gf * c + gi * gg                        # f32 update
            h = go * jnp.tanh(c)                        # f32
            h_bf = h.astype(out_ref.dtype)              # bf16 MXU / store feed

            # Layer output: only the first seq_len timesteps are kept.
            s_hi = min(hi, TB)
            if lo < TB:
                rows = h_bf if s_hi == hi else h_bf[:s_hi - lo]
                if last:
                    out_ref[lo:s_hi, :] = rows          # direct final output
                else:
                    act_scr[lo:s_hi, :] = rows          # feeds next layer only


# ------------------------------ Wrapper ------------------------------------ #
def stacked_drnn_forward(x, wx, u, b, *, dilation, seq_len, batch_size,
                         hidden_size):
    """x: (seq_len, batch, input_size). Mirrors StackedDRNN.forward/_forward.
    Requires input_size == hidden_size (as the PyTorch module implicitly does).
    """
    input_size = x.shape[-1]
    assert input_size == hidden_size, "module requires input_size == hidden_size"
    pads = [(r - seq_len % r) % r for r in dilation]
    l_max = max(seq_len + p for p in pads)

    # (T, B, F) -> (T*B, F) is a contiguous reshape; dilated chunks become
    # contiguous row ranges of this flat slab inside the kernel.
    x2 = x.reshape(seq_len * batch_size, input_size)

    kernel = functools.partial(
        _stacked_drnn_kernel, rates=tuple(dilation), seq_len=seq_len,
        batch=batch_size, hidden=hidden_size)

    y2 = pl.pallas_call(
        kernel,
        out_shape=jax.ShapeDtypeStruct(
            (seq_len * batch_size, hidden_size), x.dtype),
        in_specs=[pl.BlockSpec(memory_space=pltpu.MemorySpace.VMEM)] * 4,
        out_specs=pl.BlockSpec(memory_space=pltpu.MemorySpace.VMEM),
        scratch_shapes=[
            pltpu.VMEM((l_max * batch_size, hidden_size), x.dtype)],
    )(x2, wx, u, b)

    return y2.reshape(seq_len, batch_size, hidden_size)


# --------------------------- Parameter creation ---------------------------- #
def _xavier_normal(key, shape):
    fan_in, fan_out = shape
    std = (2.0 / (fan_in + fan_out)) ** 0.5
    return std * jax.random.normal(key, shape, jnp.float32)


def init_params(key, n_layers, input_size, hidden_size, dtype):
    """Packed per-layer weights, gate order (i, f, o, g):
        Wx: (In, 4H), U: (H, 4H), b: (1, 4H).
    The g-gate columns of Wx/U and the g bias are pre-scaled by 2 so the kernel
    can use tanh(g) = 2*sigmoid(2g) - 1 with a single full-width sigmoid.
    Biases are ones, matching the PyTorch module (single bias per gate)."""
    H = hidden_size
    wxs, us, bs = [], [], []
    for l in range(n_layers):
        keys = jax.random.split(jax.random.fold_in(key, l), 8)
        wx_g = [_xavier_normal(keys[k], (input_size, H)) for k in range(4)]
        u_g = [_xavier_normal(keys[4 + k], (H, H)) for k in range(4)]
        wx_g[3] = 2.0 * wx_g[3]          # pre-scale g columns (exact in bf16)
        u_g[3] = 2.0 * u_g[3]
        wxs.append(jnp.concatenate(wx_g, axis=1).astype(dtype))     # (In, 4H)
        us.append(jnp.concatenate(u_g, axis=1).astype(dtype))       # (H, 4H)
        bs.append(jnp.concatenate(
            [jnp.ones((1, 3 * H), jnp.float32),
             2.0 * jnp.ones((1, H), jnp.float32)], axis=1))         # (1, 4H)
    return jnp.stack(wxs), jnp.stack(us), jnp.stack(bs)


# ------------------------- Pure-JAX reference ------------------------------ #
def stacked_drnn_reference(x2, wx, u, b, *, dilation, seq_len, batch_size,
                           hidden_size):
    """Original LSTM formulation (sigmoid i/f/o, tanh g), undoing the 2x
    g-column pre-scale; bf16 activations / h feed to match the kernel."""
    H, B, T = hidden_size, batch_size, seq_len

    def unscale(w):
        return jnp.concatenate([w[..., :3 * H], 0.5 * w[..., 3 * H:]], axis=-1)

    act = x2
    for l, rate in enumerate(dilation):
        pad = (rate - T % rate) % rate
        L = T + pad
        rB = rate * B
        wx_l = unscale(wx[l].astype(jnp.float32))
        u_l = unscale(u[l].astype(jnp.float32))
        b_l = unscale(b[l][0])
        xs = jnp.concatenate(
            [act, jnp.zeros((pad * B, H), act.dtype)], axis=0).astype(jnp.float32)
        h_bf = jnp.zeros((rB, H), jnp.bfloat16)
        c = jnp.zeros((rB, H), jnp.float32)
        outs = []
        for i in range(L // rate):
            xt = xs[i * rB:(i + 1) * rB]
            g_lin = xt @ wx_l + h_bf.astype(jnp.float32) @ u_l + b_l
            gi = jax.nn.sigmoid(g_lin[:, :H])
            gf = jax.nn.sigmoid(g_lin[:, H:2 * H])
            go = jax.nn.sigmoid(g_lin[:, 2 * H:3 * H])
            gg = jnp.tanh(g_lin[:, 3 * H:])
            c = gf * c + gi * gg
            h = go * jnp.tanh(c)
            h_bf = h.astype(jnp.bfloat16)
            outs.append(h_bf)
        act = jnp.concatenate(outs, axis=0)[:T * B]
    return act


# --------------------------------- Main ------------------------------------ #
if __name__ == "__main__":
    batch_size = 2
    seq_len = 8
    input_size = hidden_size = 32   # module requires input_size == hidden_size
    dilation = [1, 2, 4]

    key = jax.random.PRNGKey(0)
    pkey, xkey = jax.random.split(key)
    wx, u, b = init_params(pkey, len(dilation), input_size, hidden_size, DTYPE)
    x = jax.random.normal(
        xkey, (seq_len, batch_size, input_size), jnp.float32).astype(DTYPE)

    # TODO(synk): LSTMscan and the h_resident/c_resident "state_now" buffers are
    # undefined in the reference source; a standard (i,f,o,g) LSTM cell with
    # zero-initialized per-layer state is implemented and residents are omitted.
    fwd = jax.jit(functools.partial(
        stacked_drnn_forward, dilation=tuple(dilation), seq_len=seq_len,
        batch_size=batch_size, hidden_size=hidden_size))

    y = fwd(x, wx, u, b)
    jax.block_until_ready(y)
    assert y.shape == (seq_len, batch_size, hidden_size)
    assert bool(jnp.all(jnp.isfinite(y.astype(jnp.float32))))

    # Numerical check against the plain-JAX reference (classic gate math).
    y_ref = stacked_drnn_reference(
        x.reshape(seq_len * batch_size, hidden_size), wx, u, b,
        dilation=tuple(dilation), seq_len=seq_len, batch_size=batch_size,
        hidden_size=hidden_size)
    err = float(jnp.max(jnp.abs(
        y.reshape(seq_len * batch_size, hidden_size).astype(jnp.float32)
        - y_ref.astype(jnp.float32))))
    assert err < 5e-2, f"max abs error vs reference: {err}"

    print("KERNEL_OK")
</pallas_src>

<mosaic_0001>
module attributes {stable_mosaic.version = 11 : i64} {
  func.func @_stacked_drnn_kernel(%arg0: memref<16x32xbf16, #tpu.memory_space<vmem>>, %arg1: memref<3x32x128xbf16, #tpu.memory_space<vmem>>, %arg2: memref<3x32x128xbf16, #tpu.memory_space<vmem>>, %arg3: memref<3x1x128xf32, #tpu.memory_space<vmem>>, %arg4: memref<16x32xbf16, #tpu.memory_space<vmem>>, %arg5: memref<16x32xbf16, #tpu.memory_space<vmem>>) attributes {dimension_semantics = [], scalar_prefetch = 0 : i64, scratch_operands = 1 : i64, tpu.core_type = #tpu.core_type<tc>} {
    %c0 = arith.constant 0 : index
    %c0_0 = arith.constant 0 : index
    %0 = vector.load %arg0[%c0, %c0_0] : memref<16x32xbf16, #tpu.memory_space<vmem>>, vector<16x32xbf16>
    %c0_1 = arith.constant 0 : index
    %c0_2 = arith.constant 0 : index
    %c0_3 = arith.constant 0 : index
    %1 = vector.load %arg1[%c0_1, %c0_2, %c0_3] : memref<3x32x128xbf16, #tpu.memory_space<vmem>>, vector<1x32x128xbf16>
    %2 = vector.shape_cast %1 : vector<1x32x128xbf16> to vector<32x128xbf16>
    %cst = arith.constant dense<0.000000e+00> : vector<16x128xf32>
    %3 = tpu.matmul %0, %2, %cst {dimension_numbers = #tpu.dot_dimension_numbers<[1], [0], [0], [1], [0, 0, 1, 1], [], []>} : vector<16x32xbf16>, vector<32x128xbf16>, vector<16x128xf32> -> vector<16x128xf32>
    %c0_4 = arith.constant 0 : index
    %c0_5 = arith.constant 0 : index
    %c0_6 = arith.constant 0 : index
    %4 = vector.load %arg3[%c0_4, %c0_5, %c0_6] : memref<3x1x128xf32, #tpu.memory_space<vmem>>, vector<1x1x128xf32>
    %5 = vector.shape_cast %4 : vector<1x1x128xf32> to vector<1x128xf32>
    %6 = vector.shape_cast %5 : vector<1x128xf32> to vector<1x128xf32>
    %7 = vector.broadcast %6 : vector<1x128xf32> to vector<16x128xf32>
    %8 = arith.addf %3, %7 : vector<16x128xf32>
    %c0_7 = arith.constant 0 : index
    %c0_8 = arith.constant 0 : index
    %c0_9 = arith.constant 0 : index
    %9 = vector.load %arg2[%c0_7, %c0_8, %c0_9] : memref<3x32x128xbf16, #tpu.memory_space<vmem>>, vector<1x32x128xbf16>
    %10 = vector.shape_cast %9 : vector<1x32x128xbf16> to vector<32x128xbf16>
    %cst_10 = arith.constant 0.000000e+00 : f32
    %11 = vector.broadcast %cst_10 : f32 to vector<2x32xf32>
    %12 = vector.extract_strided_slice %8 {offsets = [0, 0], sizes = [2, 128], strides = [1, 1]} : vector<16x128xf32> to vector<2x128xf32>
    %13 = arith.negf %12 : vector<2x128xf32>
    %14 = math.exp %13 : vector<2x128xf32>
    %cst_11 = arith.constant 1.000000e+00 : f32
    %15 = vector.broadcast %cst_11 : f32 to vector<2x128xf32>
    %16 = arith.addf %15, %14 : vector<2x128xf32>
    %17 = arith.divf %15, %16 : vector<2x128xf32>
    %18 = vector.extract_strided_slice %17 {offsets = [0, 0], sizes = [2, 32], strides = [1, 1]} : vector<2x128xf32> to vector<2x32xf32>
    %19 = vector.extract_strided_slice %17 {offsets = [0, 32], sizes = [2, 32], strides = [1, 1]} : vector<2x128xf32> to vector<2x32xf32>
    %20 = vector.extract_strided_slice %17 {offsets = [0, 64], sizes = [2, 32], strides = [1, 1]} : vector<2x128xf32> to vector<2x32xf32>
    %21 = vector.extract_strided_slice %17 {offsets = [0, 96], sizes = [2, 32], strides = [1, 1]} : vector<2x128xf32> to vector<2x32xf32>
    %cst_12 = arith.constant 2.000000e+00 : f32
    %22 = vector.broadcast %cst_12 : f32 to vector<2x32xf32>
    %23 = arith.mulf %22, %21 : vector<2x32xf32>
    %cst_13 = arith.constant 1.000000e+00 : f32
    %24 = vector.broadcast %cst_13 : f32 to vector<2x32xf32>
    %25 = arith.subf %23, %24 : vector<2x32xf32>
    %26 = arith.mulf %19, %11 : vector<2x32xf32>
    %27 = arith.mulf %18, %25 : vector<2x32xf32>
    %28 = arith.addf %26, %27 : vector<2x32xf32>
    %29 = math.tanh %28 : vector<2x32xf32>
    %30 = arith.mulf %20, %29 : vector<2x32xf32>
    %31 = arith.truncf %30 : vector<2x32xf32> to vector<2x32xbf16>
    %c0_14 = arith.constant 0 : index
    %c0_15 = arith.constant 0 : index
    %32 = vector.load %arg5[%c0_14, %c0_15] : memref<16x32xbf16, #tpu.memory_space<vmem>>, vector<2x32xbf16>
    tpu.vector_store %arg5[%c0_14, %c0_15], %31 {strides = array<i32>} : memref<16x32xbf16, #tpu.memory_space<vmem>>, vector<2x32xbf16>,
    %33 = vector.extract_strided_slice %8 {offsets = [2, 0], sizes = [2, 128], strides = [1, 1]} : vector<16x128xf32> to vector<2x128xf32>
    %cst_16 = arith.constant dense<0.000000e+00> : vector<2x128xf32>
    %34 = tpu.matmul %31, %10, %cst_16 {dimension_numbers = #tpu.dot_dimension_numbers<[1], [0], [0], [1], [0, 0, 1, 1], [], []>} : vector<2x32xbf16>, vector<32x128xbf16>, vector<2x128xf32> -> vector<2x128xf32>
    %35 = arith.addf %33, %34 : vector<2x128xf32>
    %36 = arith.negf %35 : vector<2x128xf32>
    %37 = math.exp %36 : vector<2x128xf32>
    %cst_17 = arith.constant 1.000000e+00 : f32
    %38 = vector.broadcast %cst_17 : f32 to vector<2x128xf32>
    %39 = arith.addf %38, %37 : vector<2x128xf32>
    %40 = arith.divf %38, %39 : vector<2x128xf32>
    %41 = vector.extract_strided_slice %40 {offsets = [0, 0], sizes = [2, 32], strides = [1, 1]} : vector<2x128xf32> to vector<2x32xf32>
    %42 = vector.extract_strided_slice %40 {offsets = [0, 32], sizes = [2, 32], strides = [1, 1]} : vector<2x128xf32> to vector<2x32xf32>
    %43 = vector.extract_strided_slice %40 {offsets = [0, 64], sizes = [2, 32], strides = [1, 1]} : vector<2x128xf32> to vector<2x32xf32>
    %44 = vector.extract_strided_slice %40 {offsets = [0, 96], sizes = [2, 32], strides = [1, 1]} : vector<2x128xf32> to vector<2x32xf32>
    %cst_18 = arith.constant 2.000000e+00 : f32
    %45 = vector.broadcast %cst_18 : f32 to vector<2x32xf32>
    %46 = arith.mulf %45, %44 : vector<2x32xf32>
    %cst_19 = arith.constant 1.000000e+00 : f32
    %47 = vector.broadcast %cst_19 : f32 to vector<2x32xf32>
    %48 = arith.subf %46, %47 : vector<2x32xf32>
    %49 = arith.mulf %42, %28 : vector<2x32xf32>
    %50 = arith.mulf %41, %48 : vector<2x32xf32>
    %51 = arith.addf %49, %50 : vector<2x32xf32>
    %52 = math.tanh %51 : vector<2x32xf32>
    %53 = arith.mulf %43, %52 : vector<2x32xf32>
    %54 = arith.truncf %53 : vector<2x32xf32> to vector<2x32xbf16>
    %c2 = arith.constant 2 : index
    %c0_20 = arith.constant 0 : index
    %55 = vector.load %arg5[%c2, %c0_20] : memref<16x32xbf16, #tpu.memory_space<vmem>>, vector<2x32xbf16>
    tpu.vector_store %arg5[%c2, %c0_20], %54 {strides = array<i32>} : memref<16x32xbf16, #tpu.memory_space<vmem>>, vector<2x32xbf16>,
    %56 = vector.extract_strided_slice %8 {offsets = [4, 0], sizes = [2, 128], strides = [1, 1]} : vector<16x128xf32> to vector<2x128xf32>
    %cst_21 = arith.constant dense<0.000000e+00> : vector<2x128xf32>
    %57 = tpu.matmul %54, %10, %cst_21 {dimension_numbers = #tpu.dot_dimension_numbers<[1], [0], [0], [1], [0, 0, 1, 1], [], []>} : vector<2x32xbf16>, vector<32x128xbf16>, vector<2x128xf32> -> vector<2x128xf32>
    %58 = arith.addf %56, %57 : vector<2x128xf32>
    %59 = arith.negf %58 : vector<2x128xf32>
    %60 = math.exp %59 : vector<2x128xf32>
    %cst_22 = arith.constant 1.000000e+00 : f32
    %61 = vector.broadcast %cst_22 : f32 to vector<2x128xf32>
    %62 = arith.addf %61, %60 : vector<2x128xf32>
    %63 = arith.divf %61, %62 : vector<2x128xf32>
    %64 = vector.extract_strided_slice %63 {offsets = [0, 0], sizes = [2, 32], strides = [1, 1]} : vector<2x128xf32> to vector<2x32xf32>
    %65 = vector.extract_strided_slice %63 {offsets = [0, 32], sizes = [2, 32], strides = [1, 1]} : vector<2x128xf32> to vector<2x32xf32>
    %66 = vector.extract_strided_slice %63 {offsets = [0, 64], sizes = [2, 32], strides = [1, 1]} : vector<2x128xf32> to vector<2x32xf32>
    %67 = vector.extract_strided_slice %63 {offsets = [0, 96], sizes = [2, 32], strides = [1, 1]} : vector<2x128xf32> to vector<2x32xf32>
    %cst_23 = arith.constant 2.000000e+00 : f32
    %68 = vector.broadcast %cst_23 : f32 to vector<2x32xf32>
    %69 = arith.mulf %68, %67 : vector<2x32xf32>
    %cst_24 = arith.constant 1.000000e+00 : f32
    %70 = vector.broadcast %cst_24 : f32 to vector<2x32xf32>
    %71 = arith.subf %69, %70 : vector<2x32xf32>
    %72 = arith.mulf %65, %51 : vector<2x32xf32>
    %73 = arith.mulf %64, %71 : vector<2x32xf32>
    %74 = arith.addf %72, %73 : vector<2x32xf32>
    %75 = math.tanh %74 : vector<2x32xf32>
    %76 = arith.mulf %66, %75 : vector<2x32xf32>
    %77 = arith.truncf %76 : vector<2x32xf32> to vector<2x32xbf16>
    %c4 = arith.constant 4 : index
    %c0_25 = arith.constant 0 : index
    %78 = vector.load %arg5[%c4, %c0_25] : memref<16x32xbf16, #tpu.memory_space<vmem>>, vector<2x32xbf16>
    tpu.vector_store %arg5[%c4, %c0_25], %77 {strides = array<i32>} : memref<16x32xbf16, #tpu.memory_space<vmem>>, vector<2x32xbf16>,
    %79 = vector.extract_strided_slice %8 {offsets = [6, 0], sizes = [2, 128], strides = [1, 1]} : vector<16x128xf32> to vector<2x128xf32>
    %cst_26 = arith.constant dense<0.000000e+00> : vector<2x128xf32>
    %80 = tpu.matmul %77, %10, %cst_26 {dimension_numbers = #tpu.dot_dimension_numbers<[1], [0], [0], [1], [0, 0, 1, 1], [], []>} : vector<2x32xbf16>, vector<32x128xbf16>, vector<2x128xf32> -> vector<2x128xf32>
    %81 = arith.addf %79, %80 : vector<2x128xf32>
    %82 = arith.negf %81 : vector<2x128xf32>
    %83 = math.exp %82 : vector<2x128xf32>
    %cst_27 = arith.constant 1.000000e+00 : f32
    %84 = vector.broadcast %cst_27 : f32 to vector<2x128xf32>
    %85 = arith.addf %84, %83 : vector<2x128xf32>
    %86 = arith.divf %84, %85 : vector<2x128xf32>
    %87 = vector.extract_strided_slice %86 {offsets = [0, 0], sizes = [2, 32], strides = [1, 1]} : vector<2x128xf32> to vector<2x32xf32>
    %88 = vector.extract_strided_slice %86 {offsets = [0, 32], sizes = [2, 32], strides = [1, 1]} : vector<2x128xf32> to vector<2x32xf32>
    %89 = vector.extract_strided_slice %86 {offsets = [0, 64], sizes = [2, 32], strides = [1, 1]} : vector<2x128xf32> to vector<2x32xf32>
    %90 = vector.extract_strided_slice %86 {offsets = [0, 96], sizes = [2, 32], strides = [1, 1]} : vector<2x128xf32> to vector<2x32xf32>
    %cst_28 = arith.constant 2.000000e+00 : f32
    %91 = vector.broadcast %cst_28 : f32 to vector<2x32xf32>
    %92 = arith.mulf %91, %90 : vector<2x32xf32>
    %cst_29 = arith.constant 1.000000e+00 : f32
    %93 = vector.broadcast %cst_29 : f32 to vector<2x32xf32>
    %94 = arith.subf %92, %93 : vector<2x32xf32>
    %95 = arith.mulf %88, %74 : vector<2x32xf32>
    %96 = arith.mulf %87, %94 : vector<2x32xf32>
    %97 = arith.addf %95, %96 : vector<2x32xf32>
    %98 = math.tanh %97 : vector<2x32xf32>
    %99 = arith.mulf %89, %98 : vector<2x32xf32>
    %100 = arith.truncf %99 : vector<2x32xf32> to vector<2x32xbf16>
    %c6 = arith.constant 6 : index
    %c0_30 = arith.constant 0 : index
    %101 = vector.load %arg5[%c6, %c0_30] : memref<16x32xbf16, #tpu.memory_space<vmem>>, vector<2x32xbf16>
    tpu.vector_store %arg5[%c6, %c0_30], %100 {strides = array<i32>} : memref<16x32xbf16, #tpu.memory_space<vmem>>, vector<2x32xbf16>,
    %102 = vector.extract_strided_slice %8 {offsets = [8, 0], sizes = [2, 128], strides = [1, 1]} : vector<16x128xf32> to vector<2x128xf32>
    %cst_31 = arith.constant dense<0.000000e+00> : vector<2x128xf32>
    %103 = tpu.matmul %100, %10, %cst_31 {dimension_numbers = #tpu.dot_dimension_numbers<[1], [0], [0], [1], [0, 0, 1, 1], [], []>} : vector<2x32xbf16>, vector<32x128xbf16>, vector<2x128xf32> -> vector<2x128xf32>
    %104 = arith.addf %102, %103 : vector<2x128xf32>
    %105 = arith.negf %104 : vector<2x128xf32>
    %106 = math.exp %105 : vector<2x128xf32>
    %cst_32 = arith.constant 1.000000e+00 : f32
    %107 = vector.broadcast %cst_32 : f32 to vector<2x128xf32>
    %108 = arith.addf %107, %106 : vector<2x128xf32>
    %109 = arith.divf %107, %108 : vector<2x128xf32>
    %110 = vector.extract_strided_slice %109 {offsets = [0, 0], sizes = [2, 32], strides = [1, 1]} : vector<2x128xf32> to vector<2x32xf32>
    %111 = vector.extract_strided_slice %109 {offsets = [0, 32], sizes = [2, 32], strides = [1, 1]} : vector<2x128xf32> to vector<2x32xf32>
    %112 = vector.extract_strided_slice %109 {offsets = [0, 64], sizes = [2, 32], strides = [1, 1]} : vector<2x128xf32> to vector<2x32xf32>
    %113 = vector.extract_strided_slice %109 {offsets = [0, 96], sizes = [2, 32], strides = [1, 1]} : vector<2x128xf32> to vector<2x32xf32>
    %cst_33 = arith.constant 2.000000e+00 : f32
    %114 = vector.broadcast %cst_33 : f32 to vector<2x32xf32>
    %115 = arith.mulf %114, %113 : vector<2x32xf32>
    %cst_34 = arith.constant 1.000000e+00 : f32
    %116 = vector.broadcast %cst_34 : f32 to vector<2x32xf32>
    %117 = arith.subf %115, %116 : vector<2x32xf32>
    %118 = arith.mulf %111, %97 : vector<2x32xf32>
    %119 = arith.mulf %110, %117 : vector<2x32xf32>
    %120 = arith.addf %118, %119 : vector<2x32xf32>
    %121 = math.tanh %120 : vector<2x32xf32>
    %122 = arith.mulf %112, %121 : vector<2x32xf32>
    %123 = arith.truncf %122 : vector<2x32xf32> to vector<2x32xbf16>
    %c8 = arith.constant 8 : index
    %c0_35 = arith.constant 0 : index
    %124 = vector.load %arg5[%c8, %c0_35] : memref<16x32xbf16, #tpu.memory_space<vmem>>, vector<2x32xbf16>
    tpu.vector_store %arg5[%c8, %c0_35], %123 {strides = array<i32>} : memref<16x32xbf16, #tpu.memory_space<vmem>>, vector<2x32xbf16>,
    %125 = vector.extract_strided_slice %8 {offsets = [10, 0], sizes = [2, 128], strides = [1, 1]} : vector<16x128xf32> to vector<2x128xf32>
    %cst_36 = arith.constant dense<0.000000e+00> : vector<2x128xf32>
    %126 = tpu.matmul %123, %10, %cst_36 {dimension_numbers = #tpu.dot_dimension_numbers<[1], [0], [0], [1], [0, 0, 1, 1], [], []>} : vector<2x32xbf16>, vector<32x128xbf16>, vector<2x128xf32> -> vector<2x128xf32>
    %127 = arith.addf %125, %126 : vector<2x128xf32>
    %128 = arith.negf %127 : vector<2x128xf32>
    %129 = math.exp %128 : vector<2x128xf32>
    %cst_37 = arith.constant 1.000000e+00 : f32
    %130 = vector.broadcast %cst_37 : f32 to vector<2x128xf32>
    %131 = arith.addf %130, %129 : vector<2x128xf32>
    %132 = arith.divf %130, %131 : vector<2x128xf32>
    %133 = vector.extract_strided_slice %132 {offsets = [0, 0], sizes = [2, 32], strides = [1, 1]} : vector<2x128xf32> to vector<2x32xf32>
    %134 = vector.extract_strided_slice %132 {offsets = [0, 32], sizes = [2, 32], strides = [1, 1]} : vector<2x128xf32> to vector<2x32xf32>
    %135 = vector.extract_strided_slice %132 {offsets = [0, 64], sizes = [2, 32], strides = [1, 1]} : vector<2x128xf32> to vector<2x32xf32>
    %136 = vector.extract_strided_slice %132 {offsets = [0, 96], sizes = [2, 32], strides = [1, 1]} : vector<2x128xf32> to vector<2x32xf32>
    %cst_38 = arith.constant 2.000000e+00 : f32
    %137 = vector.broadcast %cst_38 : f32 to vector<2x32xf32>
    %138 = arith.mulf %137, %136 : vector<2x32xf32>
    %cst_39 = arith.constant 1.000000e+00 : f32
    %139 = vector.broadcast %cst_39 : f32 to vector<2x32xf32>
    %140 = arith.subf %138, %139 : vector<2x32xf32>
    %141 = arith.mulf %134, %120 : vector<2x32xf32>
    %142 = arith.mulf %133, %140 : vector<2x32xf32>
    %143 = arith.addf %141, %142 : vector<2x32xf32>
    %144 = math.tanh %143 : vector<2x32xf32>
    %145 = arith.mulf %135, %144 : vector<2x32xf32>
    %146 = arith.truncf %145 : vector<2x32xf32> to vector<2x32xbf16>
    %c10 = arith.constant 10 : index
    %c0_40 = arith.constant 0 : index
    %147 = vector.load %arg5[%c10, %c0_40] : memref<16x32xbf16, #tpu.memory_space<vmem>>, vector<2x32xbf16>
    tpu.vector_store %arg5[%c10, %c0_40], %146 {strides = array<i32>} : memref<16x32xbf16, #tpu.memory_space<vmem>>, vector<2x32xbf16>,
    %148 = vector.extract_strided_slice %8 {offsets = [12, 0], sizes = [2, 128], strides = [1, 1]} : vector<16x128xf32> to vector<2x128xf32>
    %cst_41 = arith.constant dense<0.000000e+00> : vector<2x128xf32>
    %149 = tpu.matmul %146, %10, %cst_41 {dimension_numbers = #tpu.dot_dimension_numbers<[1], [0], [0], [1], [0, 0, 1, 1], [], []>} : vector<2x32xbf16>, vector<32x128xbf16>, vector<2x128xf32> -> vector<2x128xf32>
    %150 = arith.addf %148, %149 : vector<2x128xf32>
    %151 = arith.negf %150 : vector<2x128xf32>
    %152 = math.exp %151 : vector<2x128xf32>
    %cst_42 = arith.constant 1.000000e+00 : f32
    %153 = vector.broadcast %cst_42 : f32 to vector<2x128xf32>
    %154 = arith.addf %153, %152 : vector<2x128xf32>
    %155 = arith.divf %153, %154 : vector<2x128xf32>
    %156 = vector.extract_strided_slice %155 {offsets = [0, 0], sizes = [2, 32], strides = [1, 1]} : vector<2x128xf32> to vector<2x32xf32>
    %157 = vector.extract_strided_slice %155 {offsets = [0, 32], sizes = [2, 32], strides = [1, 1]} : vector<2x128xf32> to vector<2x32xf32>
    %158 = vector.extract_strided_slice %155 {offsets = [0, 64], sizes = [2, 32], strides = [1, 1]} : vector<2x128xf32> to vector<2x32xf32>
    %159 = vector.extract_strided_slice %155 {offsets = [0, 96], sizes = [2, 32], strides = [1, 1]} : vector<2x128xf32> to vector<2x32xf32>
    %cst_43 = arith.constant 2.000000e+00 : f32
    %160 = vector.broadcast %cst_43 : f32 to vector<2x32xf32>
    %161 = arith.mulf %160, %159 : vector<2x32xf32>
    %cst_44 = arith.constant 1.000000e+00 : f32
    %162 = vector.broadcast %cst_44 : f32 to vector<2x32xf32>
    %163 = arith.subf %161, %162 : vector<2x32xf32>
    %164 = arith.mulf %157, %143 : vector<2x32xf32>
    %165 = arith.mulf %156, %163 : vector<2x32xf32>
    %166 = arith.addf %164, %165 : vector<2x32xf32>
    %167 = math.tanh %166 : vector<2x32xf32>
    %168 = arith.mulf %158, %167 : vector<2x32xf32>
    %169 = arith.truncf %168 : vector<2x32xf32> to vector<2x32xbf16>
    %c12 = arith.constant 12 : index
    %c0_45 = arith.constant 0 : index
    %170 = vector.load %arg5[%c12, %c0_45] : memref<16x32xbf16, #tpu.memory_space<vmem>>, vector<2x32xbf16>
    tpu.vector_store %arg5[%c12, %c0_45], %169 {strides = array<i32>} : memref<16x32xbf16, #tpu.memory_space<vmem>>, vector<2x32xbf16>,
    %171 = vector.extract_strided_slice %8 {offsets = [14, 0], sizes = [2, 128], strides = [1, 1]} : vector<16x128xf32> to vector<2x128xf32>
    %cst_46 = arith.constant dense<0.000000e+00> : vector<2x128xf32>
    %172 = tpu.matmul %169, %10, %cst_46 {dimension_numbers = #tpu.dot_dimension_numbers<[1], [0], [0], [1], [0, 0, 1, 1], [], []>} : vector<2x32xbf16>, vector<32x128xbf16>, vector<2x128xf32> -> vector<2x128xf32>
    %173 = arith.addf %171, %172 : vector<2x128xf32>
    %174 = arith.negf %173 : vector<2x128xf32>
    %175 = math.exp %174 : vector<2x128xf32>
    %cst_47 = arith.constant 1.000000e+00 : f32
    %176 = vector.broadcast %cst_47 : f32 to vector<2x128xf32>
    %177 = arith.addf %176, %175 : vector<2x128xf32>
    %178 = arith.divf %176, %177 : vector<2x128xf32>
    %179 = vector.extract_strided_slice %178 {offsets = [0, 0], sizes = [2, 32], strides = [1, 1]} : vector<2x128xf32> to vector<2x32xf32>
    %180 = vector.extract_strided_slice %178 {offsets = [0, 32], sizes = [2, 32], strides = [1, 1]} : vector<2x128xf32> to vector<2x32xf32>
    %181 = vector.extract_strided_slice %178 {offsets = [0, 64], sizes = [2, 32], strides = [1, 1]} : vector<2x128xf32> to vector<2x32xf32>
    %182 = vector.extract_strided_slice %178 {offsets = [0, 96], sizes = [2, 32], strides = [1, 1]} : vector<2x128xf32> to vector<2x32xf32>
    %cst_48 = arith.constant 2.000000e+00 : f32
    %183 = vector.broadcast %cst_48 : f32 to vector<2x32xf32>
    %184 = arith.mulf %183, %182 : vector<2x32xf32>
    %cst_49 = arith.constant 1.000000e+00 : f32
    %185 = vector.broadcast %cst_49 : f32 to vector<2x32xf32>
    %186 = arith.subf %184, %185 : vector<2x32xf32>
    %187 = arith.mulf %180, %166 : vector<2x32xf32>
    %188 = arith.mulf %179, %186 : vector<2x32xf32>
    %189 = arith.addf %187, %188 : vector<2x32xf32>
    %190 = math.tanh %189 : vector<2x32xf32>
    %191 = arith.mulf %181, %190 : vector<2x32xf32>
    %192 = arith.truncf %191 : vector<2x32xf32> to vector<2x32xbf16>
    %c14 = arith.constant 14 : index
    %c0_50 = arith.constant 0 : index
    %193 = vector.load %arg5[%c14, %c0_50] : memref<16x32xbf16, #tpu.memory_space<vmem>>, vector<2x32xbf16>
    tpu.vector_store %arg5[%c14, %c0_50], %192 {strides = array<i32>} : memref<16x32xbf16, #tpu.memory_space<vmem>>, vector<2x32xbf16>,
    %c0_51 = arith.constant 0 : index
    %c0_52 = arith.constant 0 : index
    %194 = vector.load %arg5[%c0_51, %c0_52] : memref<16x32xbf16, #tpu.memory_space<vmem>>, vector<16x32xbf16>
    %c1 = arith.constant 1 : index
    %c0_53 = arith.constant 0 : index
    %c0_54 = arith.constant 0 : index
    %195 = vector.load %arg1[%c1, %c0_53, %c0_54] : memref<3x32x128xbf16, #tpu.memory_space<vmem>>, vector<1x32x128xbf16>
    %196 = vector.shape_cast %195 : vector<1x32x128xbf16> to vector<32x128xbf16>
    %cst_55 = arith.constant dense<0.000000e+00> : vector<16x128xf32>
    %197 = tpu.matmul %194, %196, %cst_55 {dimension_numbers = #tpu.dot_dimension_numbers<[1], [0], [0], [1], [0, 0, 1, 1], [], []>} : vector<16x32xbf16>, vector<32x128xbf16>, vector<16x128xf32> -> vector<16x128xf32>
    %c1_56 = arith.constant 1 : index
    %c0_57 = arith.constant 0 : index
    %c0_58 = arith.constant 0 : index
    %198 = vector.load %arg3[%c1_56, %c0_57, %c0_58] : memref<3x1x128xf32, #tpu.memory_space<vmem>>, vector<1x1x128xf32>
    %199 = vector.shape_cast %198 : vector<1x1x128xf32> to vector<1x128xf32>
    %200 = vector.shape_cast %199 : vector<1x128xf32> to vector<1x128xf32>
    %201 = vector.broadcast %200 : vector<1x128xf32> to vector<16x128xf32>
    %202 = arith.addf %197, %201 : vector<16x128xf32>
    %c1_59 = arith.constant 1 : index
    %c0_60 = arith.constant 0 : index
    %c0_61 = arith.constant 0 : index
    %203 = vector.load %arg2[%c1_59, %c0_60, %c0_61] : memref<3x32x128xbf16, #tpu.memory_space<vmem>>, vector<1x32x128xbf16>
    %204 = vector.shape_cast %203 : vector<1x32x128xbf16> to vector<32x128xbf16>
    %cst_62 = arith.constant 0.000000e+00 : f32
    %205 = vector.broadcast %cst_62 : f32 to vector<4x32xf32>
    %206 = vector.extract_strided_slice %202 {offsets = [0, 0], sizes = [4, 128], strides = [1, 1]} : vector<16x128xf32> to vector<4x128xf32>
    %207 = arith.negf %206 : vector<4x128xf32>
    %208 = math.exp %207 : vector<4x128xf32>
    %cst_63 = arith.constant 1.000000e+00 : f32
    %209 = vector.broadcast %cst_63 : f32 to vector<4x128xf32>
    %210 = arith.addf %209, %208 : vector<4x128xf32>
    %211 = arith.divf %209, %210 : vector<4x128xf32>
    %212 = vector.extract_strided_slice %211 {offsets = [0, 0], sizes = [4, 32], strides = [1, 1]} : vector<4x128xf32> to vector<4x32xf32>
    %213 = vector.extract_strided_slice %211 {offsets = [0, 32], sizes = [4, 32], strides = [1, 1]} : vector<4x128xf32> to vector<4x32xf32>
    %214 = vector.extract_strided_slice %211 {offsets = [0, 64], sizes = [4, 32], strides = [1, 1]} : vector<4x128xf32> to vector<4x32xf32>
    %215 = vector.extract_strided_slice %211 {offsets = [0, 96], sizes = [4, 32], strides = [1, 1]} : vector<4x128xf32> to vector<4x32xf32>
    %cst_64 = arith.constant 2.000000e+00 : f32
    %216 = vector.broadcast %cst_64 : f32 to vector<4x32xf32>
    %217 = arith.mulf %216, %215 : vector<4x32xf32>
    %cst_65 = arith.constant 1.000000e+00 : f32
    %218 = vector.broadcast %cst_65 : f32 to vector<4x32xf32>
    %219 = arith.subf %217, %218 : vector<4x32xf32>
    %220 = arith.mulf %213, %205 : vector<4x32xf32>
    %221 = arith.mulf %212, %219 : vector<4x32xf32>
    %222 = arith.addf %220, %221 : vector<4x32xf32>
    %223 = math.tanh %222 : vector<4x32xf32>
    %224 = arith.mulf %214, %223 : vector<4x32xf32>
    %225 = arith.truncf %224 : vector<4x32xf32> to vector<4x32xbf16>
    %c0_66 = arith.constant 0 : index
    %c0_67 = arith.constant 0 : index
    %226 = vector.load %arg5[%c0_66, %c0_67] : memref<16x32xbf16, #tpu.memory_space<vmem>>, vector<4x32xbf16>
    tpu.vector_store %arg5[%c0_66, %c0_67], %225 {strides = array<i32>} : memref<16x32xbf16, #tpu.memory_space<vmem>>, vector<4x32xbf16>,
    %227 = vector.extract_strided_slice %202 {offsets = [4, 0], sizes = [4, 128], strides = [1, 1]} : vector<16x128xf32> to vector<4x128xf32>
    %cst_68 = arith.constant dense<0.000000e+00> : vector<4x128xf32>
    %228 = tpu.matmul %225, %204, %cst_68 {dimension_numbers = #tpu.dot_dimension_numbers<[1], [0], [0], [1], [0, 0, 1, 1], [], []>} : vector<4x32xbf16>, vector<32x128xbf16>, vector<4x128xf32> -> vector<4x128xf32>
    %229 = arith.addf %227, %228 : vector<4x128xf32>
    %230 = arith.negf %229 : vector<4x128xf32>
    %231 = math.exp %230 : vector<4x128xf32>
    %cst_69 = arith.constant 1.000000e+00 : f32
    %232 = vector.broadcast %cst_69 : f32 to vector<4x128xf32>
    %233 = arith.addf %232, %231 : vector<4x128xf32>
    %234 = arith.divf %232, %233 : vector<4x128xf32>
    %235 = vector.extract_strided_slice %234 {offsets = [0, 0], sizes = [4, 32], strides = [1, 1]} : vector<4x128xf32> to vector<4x32xf32>
    %236 = vector.extract_strided_slice %234 {offsets = [0, 32], sizes = [4, 32], strides = [1, 1]} : vector<4x128xf32> to vector<4x32xf32>
    %237 = vector.extract_strided_slice %234 {offsets = [0, 64], sizes = [4, 32], strides = [1, 1]} : vector<4x128xf32> to vector<4x32xf32>
    %238 = vector.extract_strided_slice %234 {offsets = [0, 96], sizes = [4, 32], strides = [1, 1]} : vector<4x128xf32> to vector<4x32xf32>
    %cst_70 = arith.constant 2.000000e+00 : f32
    %239 = vector.broadcast %cst_70 : f32 to vector<4x32xf32>
    %240 = arith.mulf %239, %238 : vector<4x32xf32>
    %cst_71 = arith.constant 1.000000e+00 : f32
    %241 = vector.broadcast %cst_71 : f32 to vector<4x32xf32>
    %242 = arith.subf %240, %241 : vector<4x32xf32>
    %243 = arith.mulf %236, %222 : vector<4x32xf32>
    %244 = arith.mulf %235, %242 : vector<4x32xf32>
    %245 = arith.addf %243, %244 : vector<4x32xf32>
    %246 = math.tanh %245 : vector<4x32xf32>
    %247 = arith.mulf %237, %246 : vector<4x32xf32>
    %248 = arith.truncf %247 : vector<4x32xf32> to vector<4x32xbf16>
    %c4_72 = arith.constant 4 : index
    %c0_73 = arith.constant 0 : index
    %249 = vector.load %arg5[%c4_72, %c0_73] : memref<16x32xbf16, #tpu.memory_space<vmem>>, vector<4x32xbf16>
    tpu.vector_store %arg5[%c4_72, %c0_73], %248 {strides = array<i32>} : memref<16x32xbf16, #tpu.memory_space<vmem>>, vector<4x32xbf16>,
    %250 = vector.extract_strided_slice %202 {offsets = [8, 0], sizes = [4, 128], strides = [1, 1]} : vector<16x128xf32> to vector<4x128xf32>
    %cst_74 = arith.constant dense<0.000000e+00> : vector<4x128xf32>
    %251 = tpu.matmul %248, %204, %cst_74 {dimension_numbers = #tpu.dot_dimension_numbers<[1], [0], [0], [1], [0, 0, 1, 1], [], []>} : vector<4x32xbf16>, vector<32x128xbf16>, vector<4x128xf32> -> vector<4x128xf32>
    %252 = arith.addf %250, %251 : vector<4x128xf32>
    %253 = arith.negf %252 : vector<4x128xf32>
    %254 = math.exp %253 : vector<4x128xf32>
    %cst_75 = arith.constant 1.000000e+00 : f32
    %255 = vector.broadcast %cst_75 : f32 to vector<4x128xf32>
    %256 = arith.addf %255, %254 : vector<4x128xf32>
    %257 = arith.divf %255, %256 : vector<4x128xf32>
    %258 = vector.extract_strided_slice %257 {offsets = [0, 0], sizes = [4, 32], strides = [1, 1]} : vector<4x128xf32> to vector<4x32xf32>
    %259 = vector.extract_strided_slice %257 {offsets = [0, 32], sizes = [4, 32], strides = [1, 1]} : vector<4x128xf32> to vector<4x32xf32>
    %260 = vector.extract_strided_slice %257 {offsets = [0, 64], sizes = [4, 32], strides = [1, 1]} : vector<4x128xf32> to vector<4x32xf32>
    %261 = vector.extract_strided_slice %257 {offsets = [0, 96], sizes = [4, 32], strides = [1, 1]} : vector<4x128xf32> to vector<4x32xf32>
    %cst_76 = arith.constant 2.000000e+00 : f32
    %262 = vector.broadcast %cst_76 : f32 to vector<4x32xf32>
    %263 = arith.mulf %262, %261 : vector<4x32xf32>
    %cst_77 = arith.constant 1.000000e+00 : f32
    %264 = vector.broadcast %cst_77 : f32 to vector<4x32xf32>
    %265 = arith.subf %263, %264 : vector<4x32xf32>
    %266 = arith.mulf %259, %245 : vector<4x32xf32>
    %267 = arith.mulf %258, %265 : vector<4x32xf32>
    %268 = arith.addf %266, %267 : vector<4x32xf32>
    %269 = math.tanh %268 : vector<4x32xf32>
    %270 = arith.mulf %260, %269 : vector<4x32xf32>
    %271 = arith.truncf %270 : vector<4x32xf32> to vector<4x32xbf16>
    %c8_78 = arith.constant 8 : index
    %c0_79 = arith.constant 0 : index
    %272 = vector.load %arg5[%c8_78, %c0_79] : memref<16x32xbf16, #tpu.memory_space<vmem>>, vector<4x32xbf16>
    tpu.vector_store %arg5[%c8_78, %c0_79], %271 {strides = array<i32>} : memref<16x32xbf16, #tpu.memory_space<vmem>>, vector<4x32xbf16>,
    %273 = vector.extract_strided_slice %202 {offsets = [12, 0], sizes = [4, 128], strides = [1, 1]} : vector<16x128xf32> to vector<4x128xf32>
    %cst_80 = arith.constant dense<0.000000e+00> : vector<4x128xf32>
    %274 = tpu.matmul %271, %204, %cst_80 {dimension_numbers = #tpu.dot_dimension_numbers<[1], [0], [0], [1], [0, 0, 1, 1], [], []>} : vector<4x32xbf16>, vector<32x128xbf16>, vector<4x128xf32> -> vector<4x128xf32>
    %275 = arith.addf %273, %274 : vector<4x128xf32>
    %276 = arith.negf %275 : vector<4x128xf32>
    %277 = math.exp %276 : vector<4x128xf32>
    %cst_81 = arith.constant 1.000000e+00 : f32
    %278 = vector.broadcast %cst_81 : f32 to vector<4x128xf32>
    %279 = arith.addf %278, %277 : vector<4x128xf32>
    %280 = arith.divf %278, %279 : vector<4x128xf32>
    %281 = vector.extract_strided_slice %280 {offsets = [0, 0], sizes = [4, 32], strides = [1, 1]} : vector<4x128xf32> to vector<4x32xf32>
    %282 = vector.extract_strided_slice %280 {offsets = [0, 32], sizes = [4, 32], strides = [1, 1]} : vector<4x128xf32> to vector<4x32xf32>
    %283 = vector.extract_strided_slice %280 {offsets = [0, 64], sizes = [4, 32], strides = [1, 1]} : vector<4x128xf32> to vector<4x32xf32>
    %284 = vector.extract_strided_slice %280 {offsets = [0, 96], sizes = [4, 32], strides = [1, 1]} : vector<4x128xf32> to vector<4x32xf32>
    %cst_82 = arith.constant 2.000000e+00 : f32
    %285 = vector.broadcast %cst_82 : f32 to vector<4x32xf32>
    %286 = arith.mulf %285, %284 : vector<4x32xf32>
    %cst_83 = arith.constant 1.000000e+00 : f32
    %287 = vector.broadcast %cst_83 : f32 to vector<4x32xf32>
    %288 = arith.subf %286, %287 : vector<4x32xf32>
    %289 = arith.mulf %282, %268 : vector<4x32xf32>
    %290 = arith.mulf %281, %288 : vector<4x32xf32>
    %291 = arith.addf %289, %290 : vector<4x32xf32>
    %292 = math.tanh %291 : vector<4x32xf32>
    %293 = arith.mulf %283, %292 : vector<4x32xf32>
    %294 = arith.truncf %293 : vector<4x32xf32> to vector<4x32xbf16>
    %c12_84 = arith.constant 12 : index
    %c0_85 = arith.constant 0 : index
    %295 = vector.load %arg5[%c12_84, %c0_85] : memref<16x32xbf16, #tpu.memory_space<vmem>>, vector<4x32xbf16>
    tpu.vector_store %arg5[%c12_84, %c0_85], %294 {strides = array<i32>} : memref<16x32xbf16, #tpu.memory_space<vmem>>, vector<4x32xbf16>,
    %c0_86 = arith.constant 0 : index
    %c0_87 = arith.constant 0 : index
    %296 = vector.load %arg5[%c0_86, %c0_87] : memref<16x32xbf16, #tpu.memory_space<vmem>>, vector<16x32xbf16>
    %c2_88 = arith.constant 2 : index
    %c0_89 = arith.constant 0 : index
    %c0_90 = arith.constant 0 : index
    %297 = vector.load %arg1[%c2_88, %c0_89, %c0_90] : memref<3x32x128xbf16, #tpu.memory_space<vmem>>, vector<1x32x128xbf16>
    %298 = vector.shape_cast %297 : vector<1x32x128xbf16> to vector<32x128xbf16>
    %cst_91 = arith.constant dense<0.000000e+00> : vector<16x128xf32>
    %299 = tpu.matmul %296, %298, %cst_91 {dimension_numbers = #tpu.dot_dimension_numbers<[1], [0], [0], [1], [0, 0, 1, 1], [], []>} : vector<16x32xbf16>, vector<32x128xbf16>, vector<16x128xf32> -> vector<16x128xf32>
    %c2_92 = arith.constant 2 : index
    %c0_93 = arith.constant 0 : index
    %c0_94 = arith.constant 0 : index
    %300 = vector.load %arg3[%c2_92, %c0_93, %c0_94] : memref<3x1x128xf32, #tpu.memory_space<vmem>>, vector<1x1x128xf32>
    %301 = vector.shape_cast %300 : vector<1x1x128xf32> to vector<1x128xf32>
    %302 = vector.shape_cast %301 : vector<1x128xf32> to vector<1x128xf32>
    %303 = vector.broadcast %302 : vector<1x128xf32> to vector<16x128xf32>
    %304 = arith.addf %299, %303 : vector<16x128xf32>
    %c2_95 = arith.constant 2 : index
    %c0_96 = arith.constant 0 : index
    %c0_97 = arith.constant 0 : index
    %305 = vector.load %arg2[%c2_95, %c0_96, %c0_97] : memref<3x32x128xbf16, #tpu.memory_space<vmem>>, vector<1x32x128xbf16>
    %306 = vector.shape_cast %305 : vector<1x32x128xbf16> to vector<32x128xbf16>
    %cst_98 = arith.constant 0.000000e+00 : f32
    %307 = vector.broadcast %cst_98 : f32 to vector<8x32xf32>
    %308 = vector.extract_strided_slice %304 {offsets = [0, 0], sizes = [8, 128], strides = [1, 1]} : vector<16x128xf32> to vector<8x128xf32>
    %309 = arith.negf %308 : vector<8x128xf32>
    %310 = math.exp %309 : vector<8x128xf32>
    %cst_99 = arith.constant 1.000000e+00 : f32
    %311 = vector.broadcast %cst_99 : f32 to vector<8x128xf32>
    %312 = arith.addf %311, %310 : vector<8x128xf32>
    %313 = arith.divf %311, %312 : vector<8x128xf32>
    %314 = vector.extract_strided_slice %313 {offsets = [0, 0], sizes = [8, 32], strides = [1, 1]} : vector<8x128xf32> to vector<8x32xf32>
    %315 = vector.extract_strided_slice %313 {offsets = [0, 32], sizes = [8, 32], strides = [1, 1]} : vector<8x128xf32> to vector<8x32xf32>
    %316 = vector.extract_strided_slice %313 {offsets = [0, 64], sizes = [8, 32], strides = [1, 1]} : vector<8x128xf32> to vector<8x32xf32>
    %317 = vector.extract_strided_slice %313 {offsets = [0, 96], sizes = [8, 32], strides = [1, 1]} : vector<8x128xf32> to vector<8x32xf32>
    %cst_100 = arith.constant 2.000000e+00 : f32
    %318 = vector.broadcast %cst_100 : f32 to vector<8x32xf32>
    %319 = arith.mulf %318, %317 : vector<8x32xf32>
    %cst_101 = arith.constant 1.000000e+00 : f32
    %320 = vector.broadcast %cst_101 : f32 to vector<8x32xf32>
    %321 = arith.subf %319, %320 : vector<8x32xf32>
    %322 = arith.mulf %315, %307 : vector<8x32xf32>
    %323 = arith.mulf %314, %321 : vector<8x32xf32>
    %324 = arith.addf %322, %323 : vector<8x32xf32>
    %325 = math.tanh %324 : vector<8x32xf32>
    %326 = arith.mulf %316, %325 : vector<8x32xf32>
    %327 = arith.truncf %326 : vector<8x32xf32> to vector<8x32xbf16>
    %c0_102 = arith.constant 0 : index
    %c0_103 = arith.constant 0 : index
    %328 = vector.load %arg4[%c0_102, %c0_103] : memref<16x32xbf16, #tpu.memory_space<vmem>>, vector<8x32xbf16>
    tpu.vector_store %arg4[%c0_102, %c0_103], %327 {strides = array<i32>} : memref<16x32xbf16, #tpu.memory_space<vmem>>, vector<8x32xbf16>,
    %329 = vector.extract_strided_slice %304 {offsets = [8, 0], sizes = [8, 128], strides = [1, 1]} : vector<16x128xf32> to vector<8x128xf32>
    %cst_104 = arith.constant dense<0.000000e+00> : vector<8x128xf32>
    %330 = tpu.matmul %327, %306, %cst_104 {dimension_numbers = #tpu.dot_dimension_numbers<[1], [0], [0], [1], [0, 0, 1, 1], [], []>} : vector<8x32xbf16>, vector<32x128xbf16>, vector<8x128xf32> -> vector<8x128xf32>
    %331 = arith.addf %329, %330 : vector<8x128xf32>
    %332 = arith.negf %331 : vector<8x128xf32>
    %333 = math.exp %332 : vector<8x128xf32>
    %cst_105 = arith.constant 1.000000e+00 : f32
    %334 = vector.broadcast %cst_105 : f32 to vector<8x128xf32>
    %335 = arith.addf %334, %333 : vector<8x128xf32>
    %336 = arith.divf %334, %335 : vector<8x128xf32>
    %337 = vector.extract_strided_slice %336 {offsets = [0, 0], sizes = [8, 32], strides = [1, 1]} : vector<8x128xf32> to vector<8x32xf32>
    %338 = vector.extract_strided_slice %336 {offsets = [0, 32], sizes = [8, 32], strides = [1, 1]} : vector<8x128xf32> to vector<8x32xf32>
    %339 = vector.extract_strided_slice %336 {offsets = [0, 64], sizes = [8, 32], strides = [1, 1]} : vector<8x128xf32> to vector<8x32xf32>
    %340 = vector.extract_strided_slice %336 {offsets = [0, 96], sizes = [8, 32], strides = [1, 1]} : vector<8x128xf32> to vector<8x32xf32>
    %cst_106 = arith.constant 2.000000e+00 : f32
    %341 = vector.broadcast %cst_106 : f32 to vector<8x32xf32>
    %342 = arith.mulf %341, %340 : vector<8x32xf32>
    %cst_107 = arith.constant 1.000000e+00 : f32
    %343 = vector.broadcast %cst_107 : f32 to vector<8x32xf32>
    %344 = arith.subf %342, %343 : vector<8x32xf32>
    %345 = arith.mulf %338, %324 : vector<8x32xf32>
    %346 = arith.mulf %337, %344 : vector<8x32xf32>
    %347 = arith.addf %345, %346 : vector<8x32xf32>
    %348 = math.tanh %347 : vector<8x32xf32>
    %349 = arith.mulf %339, %348 : vector<8x32xf32>
    %350 = arith.truncf %349 : vector<8x32xf32> to vector<8x32xbf16>
    %c8_108 = arith.constant 8 : index
    %c0_109 = arith.constant 0 : index
    %351 = vector.load %arg4[%c8_108, %c0_109] : memref<16x32xbf16, #tpu.memory_space<vmem>>, vector<8x32xbf16>
    tpu.vector_store %arg4[%c8_108, %c0_109], %350 {strides = array<i32>} : memref<16x32xbf16, #tpu.memory_space<vmem>>, vector<8x32xbf16>,
    return
  }
}

</mosaic_0001>

<bundles_post_ra>
// kernel: stacked_drnn_forward.1
= control target key start
LH: loop header
LB: loop body
LE: loop exit
PB: predicated region body
PF: predicated region fallthrough
CT: control target
= control target key end

     0   :  { %9 = vsyncpa [#allocation4], 0  ;;  %s1714_s0 = inlined_call_operand.hbm [shape: bf16[16,32], index: 0, kind: input, shape index: {}]   ;;  %s1715_s1 = inlined_call_operand.hbm [shape: bf16[3,32,128], index: 1, kind: input, shape index: {}]   ;;  %s1716_s2 = inlined_call_operand.hbm [shape: bf16[3,32,128], index: 2, kind: input, shape index: {}]   ;;  %s1717_s3 = inlined_call_operand.vmem [shape: f32[3,1,128], index: 3, kind: input, shape index: {}]   ;;  %s1718_s4 = inlined_call_operand.hbm [shape: bf16[16,32], index: 4, kind: output, shape index: {}]  }
   0x1   :  { %10 = vsyncpa [#allocation7], 0 }
   0x2   :  { %11 = vsyncpa [#allocation5], 0  ;;  %s29_s17 = sshll.u32 %s1715_s1, 4  ;;  %s1502_s18 = smov [#allocation6]   ;;  %s30_s17 = int_to_ptr.hbm [resolvable:$true] %s29_s17 }
   0x3   :  { %s31_s19 = sshll.u32 %s1502_s18, 4  ;;  %s16_s22 = sshll.u32 %s1714_s0, 4  ;;  %s32_s19 = int_to_ptr.vmem [resolvable:$true] %s31_s19  ;;  %s17_s22 = int_to_ptr.hbm [resolvable:$true] %s16_s22 }
   0x4   :  { %s1503_s23 = smov 64   ;;  %s1504_s24 = smov 4  }
   0x5   :  { %37 = dma.hbm_to_vmem [thread:$0]  %s30_s17, 768, %s32_s19, [#allocation7], %s1503_s23, %s1503_s23, %s1504_s24  }
   0x6   :  { %s1505_s25 = smov [#allocation3]   ;;  %s42_s1 = sshll.u32 %s1716_s2, 4  ;;  %s43_s1 = int_to_ptr.hbm [resolvable:$true] %s42_s1 }
   0x7   :  { %s18_s26 = sshll.u32 %s1505_s25, 4  ;;  %s1506_s0 = smov [#allocation8]   ;;  %s19_s26 = int_to_ptr.vmem [resolvable:$true] %s18_s26 }
   0x8   :  { %24 = dma.hbm_to_vmem [thread:$0]  %s17_s22, 128, %s19_s26, [#allocation4], %s1503_s23, %s1503_s23, %s1504_s24  }
   0x9   :  { %s44_s29 = sshll.u32 %s1506_s0, 4  ;;  %s45_s29 = int_to_ptr.vmem [resolvable:$true] %s44_s29 }
   0xa   :  { %50 = dma.hbm_to_vmem [thread:$0]  %s43_s1, 768, %s45_s29, [#allocation7], %s1503_s23, %s1503_s23, %s1504_s24  }
   0xb   :  { %1496 = dma.done.wait [#allocation4], 128  }
   0xc   :  { %1497 = vsyncadd [#allocation4], 4294967168 }
   0xd   :  { %1498 = dma.done.wait [#allocation7], 1536  }
   0xe   :  { %1499 = vsyncadd [#allocation7], 4294965760  ;;  %v1293_v0 = vld [vmem:[#allocation6 + $0x8] sm:$0xff]  ;;  %v1292_v1 = vld [vmem:[#allocation6] sm:$0xff]  ;;  %vm93_vm0 = vcmask 261120   ;;  %s1507_s5 = smov 32  }
   0xf   :  { %103 = vmatpush.bf16.msra.mxu0 %v1293_v0  ;;  %v1291_v2 = vld [vmem:[#allocation3] sm:$0xff]  ;;  %v1556_v3 = vld [vmem:[%s1717_s3] ss:$0 sm:$0xff]  ;;  %s1173_s13 = sshll.u32 %s1718_s4, 4  ;;  %s1174_s13 = int_to_ptr.hbm [resolvable:$true] %s1173_s13 }
  0x10   :  { %v1295_v27 = vld [vmem:[#allocation8 + $0x8] sm:$0xff]  ;;  %v1294_v28 = vld [vmem:[#allocation8] sm:$0xff] }
  0x11   :  { %185 = vmatpush.bf16.msra.mxu1 %v1295_v27  ;;  %258 = vmatpush.bf16.msra.mxu2 %v1295_v27 }
  0x12   :  { %331 = vmatpush.bf16.msra.mxu3 %v1295_v27 }
  0x13   :  { %104 = vmatpush.bf16.msra.mxu0 %v1292_v1 }
  0x15   :  { %186 = vmatpush.bf16.msra.mxu1 %v1294_v28  ;;  %259 = vmatpush.bf16.msra.mxu2 %v1294_v28 }
  0x16   :  { %1199 = vmatmul.msk.bf16.vlgmr.msra.gmra.mxu0 %vm93_vm0, %v1291_v2  ;;  %332 = vmatpush.bf16.msra.mxu3 %v1294_v28 }
  0x17   :  { %404 = vmatpush.bf16.msrb.mxu0 %v1295_v27 }
  0x19   :  { %472 = vmatpush.bf16.msrb.mxu1 %v1295_v27  ;;  %544 = vmatpush.bf16.msrb.mxu2 %v1295_v27 }
  0x1a   :  { %616 = vmatpush.bf16.msrb.mxu3 %v1295_v27 }
  0x1b   :  { %405 = vmatpush.bf16.msrb.mxu0 %v1294_v28 }
  0x1d   :  { %473 = vmatpush.bf16.msrb.mxu1 %v1294_v28  ;;  %545 = vmatpush.bf16.msrb.mxu2 %v1294_v28 }
  0x1e   :  { %617 = vmatpush.bf16.msrb.mxu3 %v1294_v28 }
  0x93   :  { %v106_v4 = vpop.f32.mrf.mxu0 }
  0x94   :  { %v1559_v5 = vadd.f32 %v1556_v3, %v106_v4 }
  0x96   :  { %v1200_v6 = vmul.f32 -1.442695, %v1559_v5 }
  0x98   :  { %1316 = vpow2.f32 %v1200_v6 }
  0x9e   :  { %v1317_v7 = vpop.eup %1316 }
  0x9f   :  { %v118_v8 = vadd.f32 1.0, %v1317_v7 }
  0xa1   :  { %1318 = vrcp.f32 %v118_v8  ;;  %v130_v12 = vand.u32 2147483648, %v118_v8  ;;  %v128_v14 = vand.u32 2147483647, %v118_v8  ;;  %vm124_vm2 = vweird.f32 %v118_v8 }
  0xa3   :  { %v131_v16 = vor.u32 1.1754944e-38, %v130_v12  ;;  %vm129_vm4 = vcmp.eq.f32.partialorder %v128_v14, 8.507059e+37 }
  0xa7   :  { %v1319_v9 = vpop.eup %1318 }
  0xa8   :  { %v120_v10 = vmul.f32 %v1319_v9, %v118_v8  ;;  %vm125_vm1 = vweird.f32 %v1319_v9 }
  0xa9   :  { %vm126_vm3 = vmor %vm124_vm2, %vm125_vm1 }
  0xaa   :  { %v121_v11 = vsub.f32 1.0, %v120_v10 }
  0xac   :  { %v122_v13 = vmul.f32 %v1319_v9, %v121_v11 }
  0xae   :  { %v123_v15 = vadd.f32 %v1319_v9, %v122_v13 }
  0xb0   :  { %v127_v17 = vsel %vm126_vm3, %v1319_v9, %v123_v15 }
  0xb1   :  { %v132_v18 = vsel %vm129_vm4, %v131_v16, %v127_v17 }
  0xb2   :  { %v134_v19 = vmul.f32 2.0, %v132_v18  ;;  %v136_v23 = vmul.f32 0.0, %v132_v18 }
  0xb4   :  { %v1201_v20 = vadd.f32 -1.0, %v134_v19 }
  0xb6   :  { %138 = vrot.lane.b32.xlu0 %v1201_v20, %s1507_s5 }
 0x128   :  { %v139_v21 = vpop.permute.xlu0 %138 }
 0x129   :  { %v141_v22 = vmul.f32 %v139_v21, %v132_v18 }
 0x12b   :  { %143 = vrot.lane.b32.xlu0 %v141_v22, %s1507_s5 }
 0x19d   :  { %v144_v24 = vpop.permute.xlu0 %143 }
 0x19e   :  { %v146_v25 = vadd.f32 %v144_v24, %v136_v23 }
 0x1a0   :  { %1320 = vtanh.f32 %v146_v25  ;;  %v218_v56 = vrot.slane %v146_v25, 6 }
 0x1a6   :  { %v1321_v26 = vpop.eup %1320 }
 0x1a7   :  { %149 = vrot.lane.b32.xlu1 %v1321_v26, %s1507_s5 }
 0x219   :  { %v150_v29 = vpop.permute.xlu1 %149 }
 0x21a   :  { %v152_v30 = vmul.f32 %v150_v29, %v132_v18 }
 0x21c   :  { %v1565_v31 = vpack.c.bf16 %v152_v30, %v152_v30 }
 0x21e   :  { %v160_v32 = vunpack.c.l.b16 %v1565_v31 }
 0x220   :  { %v161_v33 = vpack.c.b16 %v160_v32, %v160_v32 }
 0x222   :  { %162 = vrot.lane.b32.xlu1 %v161_v33, %s1503_s23 }
 0x294   :  { %v163_v34 = vpop.permute.xlu1 %162 }
 0x295   :  { %1210 = vmatmul.msk.bf16.vlgmr.msra.gmra.mxu1 %vm93_vm0, %v163_v34 }
 0x312   :  { %v188_v35 = vpop.f32.mrf.mxu1 }
 0x313   :  { %v193_v36 = vrot.slane %v188_v35, 6 }
 0x315   :  { %v195_v37 = vadd.f32 %v193_v36, %v1559_v5 }
 0x317   :  { %v1211_v38 = vmul.f32 -1.442695, %v195_v37 }
 0x319   :  { %1322 = vpow2.f32 %v1211_v38 }
 0x31a   :  { %v190_v39 = vpop.f32.mrf.mxu1 }
 0x31f   :  { %v1323_v40 = vpop.eup %1322 }
 0x320   :  { %v199_v41 = vadd.f32 1.0, %v1323_v40 }
 0x322   :  { %1324 = vrcp.f32 %v199_v41  ;;  %v211_v45 = vand.u32 2147483648, %v199_v41  ;;  %v209_v47 = vand.u32 2147483647, %v199_v41  ;;  %vm205_vm6 = vweird.f32 %v199_v41 }
 0x324   :  { %v212_v49 = vor.u32 1.1754944e-38, %v211_v45  ;;  %vm210_vm8 = vcmp.eq.f32.partialorder %v209_v47, 8.507059e+37 }
 0x328   :  { %v1325_v42 = vpop.eup %1324 }
 0x329   :  { %v201_v43 = vmul.f32 %v1325_v42, %v199_v41  ;;  %vm206_vm5 = vweird.f32 %v1325_v42 }
 0x32a   :  { %vm207_vm7 = vmor %vm205_vm6, %vm206_vm5 }
 0x32b   :  { %v202_v44 = vsub.f32 1.0, %v201_v43 }
 0x32d   :  { %v203_v46 = vmul.f32 %v1325_v42, %v202_v44 }
 0x32f   :  { %v204_v48 = vadd.f32 %v1325_v42, %v203_v46 }
 0x331   :  { %v208_v50 = vsel %vm207_vm7, %v1325_v42, %v204_v48 }
 0x332   :  { %v213_v51 = vsel %vm210_vm8, %v212_v49, %v208_v50 }
 0x333   :  { %v215_v52 = vmul.f32 2.0, %v213_v51  ;;  %v220_v57 = vmul.f32 %v218_v56, %v213_v51 }
 0x335   :  { %v1212_v53 = vadd.f32 -1.0, %v215_v52 }
 0x337   :  { %222 = vrot.lane.b32.xlu2 %v1212_v53, %s1507_s5 }
 0x391   :  { %v223_v54 = vpop.permute.xlu2 %222 }
 0x392   :  { %v225_v55 = vmul.f32 %v223_v54, %v213_v51 }
 0x394   :  { %227 = vrot.lane.b32.xlu2 %v225_v55, %s1507_s5 }
 0x3ee   :  { %v228_v58 = vpop.permute.xlu2 %227 }
 0x3ef   :  { %v230_v59 = vadd.f32 %v228_v58, %v220_v57 }
 0x3f1   :  { %1326 = vtanh.f32 %v230_v59  ;;  %v291_v27 = vrot.slane %v230_v59, 6 }
 0x3f7   :  { %v1327_v60 = vpop.eup %1326 }
 0x3f8   :  { %233 = vrot.lane.b32.xlu0 %v1327_v60, %s1507_s5 }
 0x46a   :  { %v234_v61 = vpop.permute.xlu0 %233 }
 0x46b   :  { %v236_v62 = vmul.f32 %v234_v61, %v213_v51 }
 0x46d   :  { %v1574_v63 = vpack.c.bf16 %v236_v62, %v236_v62 }
 0x46f   :  { %v244_v0 = vunpack.c.l.b16 %v1574_v63 }
 0x471   :  { %v245_v1 = vpack.c.b16 %v244_v0, %v244_v0 }
 0x473   :  { %v246_v2 = vrot.slane %v245_v1, 1 }
 0x475   :  { %247 = vrot.lane.b32.xlu1 %v246_v2, %s1503_s23 }
 0x4e7   :  { %v248_v4 = vpop.permute.xlu1 %247 }
 0x4e8   :  { %1213 = vmatmul.msk.bf16.vlgmr.msra.gmra.mxu2 %vm93_vm0, %v248_v4 }
 0x56b   :  { %v261_v6 = vpop.f32.mrf.mxu2 }
 0x56c   :  { %v266_v7 = vrot.slane %v261_v6, 4 }
 0x56e   :  { %v268_v8 = vadd.f32 %v266_v7, %v1559_v5 }
 0x570   :  { %v1214_v9 = vmul.f32 -1.442695, %v268_v8 }
 0x572   :  { %1328 = vpow2.f32 %v1214_v9 }
 0x573   :  { %v263_v10 = vpop.f32.mrf.mxu2 }
 0x578   :  { %v1329_v11 = vpop.eup %1328 }
 0x579   :  { %v272_v12 = vadd.f32 1.0, %v1329_v11  ;;  %v108_v11 = vpop.f32.mrf.mxu0 }
 0x57b   :  { %1330 = vrcp.f32 %v272_v12  ;;  %v284_v16 = vand.u32 2147483648, %v272_v12  ;;  %v282_v18 = vand.u32 2147483647, %v272_v12  ;;  %vm278_vm10 = vweird.f32 %v272_v12 }
 0x57d   :  { %v285_v20 = vor.u32 1.1754944e-38, %v284_v16  ;;  %vm283_vm12 = vcmp.eq.f32.partialorder %v282_v18, 8.507059e+37 }
 0x581   :  { %v1331_v13 = vpop.eup %1330 }
 0x582   :  { %v274_v14 = vmul.f32 %v1331_v13, %v272_v12  ;;  %vm279_vm9 = vweird.f32 %v1331_v13  ;;  %v1598_v12 = vadd.f32 %v1556_v3, %v108_v11 }
 0x583   :  { %vm280_vm11 = vmor %vm278_vm10, %vm279_vm9 }
 0x584   :  { %v275_v15 = vsub.f32 1.0, %v274_v14 }
 0x586   :  { %v276_v17 = vmul.f32 %v1331_v13, %v275_v15 }
 0x588   :  { %v277_v19 = vadd.f32 %v1331_v13, %v276_v17 }
 0x58a   :  { %v281_v21 = vsel %vm280_vm11, %v1331_v13, %v277_v19 }
 0x58b   :  { %v286_v22 = vsel %vm283_vm12, %v285_v20, %v281_v21 }
 0x58c   :  { %v288_v23 = vmul.f32 2.0, %v286_v22  ;;  %v293_v28 = vmul.f32 %v291_v27, %v286_v22 }
 0x58e   :  { %v1215_v24 = vadd.f32 -1.0, %v288_v23 }
 0x590   :  { %295 = vrot.lane.b32.xlu2 %v1215_v24, %s1507_s5 }
 0x5ea   :  { %v296_v25 = vpop.permute.xlu2 %295 }
 0x5eb   :  { %v298_v26 = vmul.f32 %v296_v25, %v286_v22 }
 0x5ed   :  { %300 = vrot.lane.b32.xlu0 %v298_v26, %s1507_s5 }
 0x65f   :  { %v301_v29 = vpop.permute.xlu0 %300 }
 0x660   :  { %v303_v30 = vadd.f32 %v301_v29, %v293_v28 }
 0x662   :  { %1332 = vtanh.f32 %v303_v30  ;;  %v364_v60 = vrot.slane %v303_v30, 6 }
 0x668   :  { %v1333_v32 = vpop.eup %1332 }
 0x669   :  { %306 = vrot.lane.b32.xlu1 %v1333_v32, %s1507_s5 }
 0x6db   :  { %v307_v33 = vpop.permute.xlu1 %306 }
 0x6dc   :  { %v309_v34 = vmul.f32 %v307_v33, %v286_v22 }
 0x6de   :  { %v1583_v35 = vpack.c.bf16 %v309_v34, %v309_v34 }
 0x6e0   :  { %v317_v36 = vunpack.c.l.b16 %v1583_v35 }
 0x6e2   :  { %v318_v37 = vpack.c.b16 %v317_v36, %v317_v36 }
 0x6e4   :  { %v319_v38 = vrot.slane %v318_v37, 2 }
 0x6e6   :  { %320 = vrot.lane.b32.xlu2 %v319_v38, %s1503_s23 }
 0x740   :  { %v321_v39 = vpop.permute.xlu2 %320 }
 0x741   :  { %1216 = vmatmul.msk.bf16.vlgmr.msra.gmra.mxu3 %vm93_vm0, %v321_v39 }
 0x7c4   :  { %v334_v40 = vpop.f32.mrf.mxu3 }
 0x7c5   :  { %v339_v41 = vrot.slane %v334_v40, 2 }
 0x7c7   :  { %v341_v42 = vadd.f32 %v339_v41, %v1559_v5 }
 0x7c9   :  { %v1217_v43 = vmul.f32 -1.442695, %v341_v42 }
 0x7cb   :  { %1334 = vpow2.f32 %v1217_v43 }
 0x7cc   :  { %v336_v44 = vpop.f32.mrf.mxu3 }
 0x7d1   :  { %v1335_v45 = vpop.eup %1334 }
 0x7d2   :  { %v345_v46 = vadd.f32 1.0, %v1335_v45 }
 0x7d4   :  { %1336 = vrcp.f32 %v345_v46  ;;  %v357_v50 = vand.u32 2147483648, %v345_v46  ;;  %v355_v52 = vand.u32 2147483647, %v345_v46  ;;  %vm351_vm14 = vweird.f32 %v345_v46 }
 0x7d6   :  { %v358_v54 = vor.u32 1.1754944e-38, %v357_v50  ;;  %vm356_vm1 = vcmp.eq.f32.partialorder %v355_v52, 8.507059e+37 }
 0x7da   :  { %v1337_v47 = vpop.eup %1336 }
 0x7db   :  { %v347_v48 = vmul.f32 %v1337_v47, %v345_v46  ;;  %vm352_vm13 = vweird.f32 %v1337_v47 }
 0x7dc   :  { %vm353_vm15 = vmor %vm351_vm14, %vm352_vm13 }
 0x7dd   :  { %v348_v49 = vsub.f32 1.0, %v347_v48 }
 0x7df   :  { %v349_v51 = vmul.f32 %v1337_v47, %v348_v49 }
 0x7e1   :  { %v350_v53 = vadd.f32 %v1337_v47, %v349_v51 }
 0x7e3   :  { %v354_v55 = vsel %vm353_vm15, %v1337_v47, %v350_v53 }
 0x7e4   :  { %v359_v5 = vsel %vm356_vm1, %v358_v54, %v354_v55 }
 0x7e5   :  { %v361_v56 = vmul.f32 2.0, %v359_v5  ;;  %v366_v61 = vmul.f32 %v364_v60, %v359_v5 }
 0x7e7   :  { %v1218_v57 = vadd.f32 -1.0, %v361_v56 }
 0x7e9   :  { %368 = vrot.lane.b32.xlu0 %v1218_v57, %s1507_s5 }
 0x85b   :  { %v369_v58 = vpop.permute.xlu0 %368 }
 0x85c   :  { %v371_v59 = vmul.f32 %v369_v58, %v359_v5 }
 0x85e   :  { %373 = vrot.lane.b32.xlu1 %v371_v59, %s1507_s5 }
 0x8d0   :  { %v374_v62 = vpop.permute.xlu1 %373 }
 0x8d1   :  { %v376_v0 = vadd.f32 %v374_v62, %v366_v61 }
 0x8d3   :  { %1338 = vtanh.f32 %v376_v0  ;;  %v434_v33 = vrot.slane %v376_v0, 6 }
 0x8d9   :  { %v1339_v1 = vpop.eup %1338 }
 0x8da   :  { %379 = vrot.lane.b32.xlu2 %v1339_v1, %s1507_s5 }
 0x934   :  { %v380_v2 = vpop.permute.xlu2 %379 }
 0x935   :  { %v382_v4 = vmul.f32 %v380_v2, %v359_v5 }
 0x937   :  { %v1592_v6 = vpack.c.bf16 %v382_v4, %v382_v4 }
 0x939   :  { %v390_v7 = vunpack.c.l.b16 %v1592_v6 }
 0x93b   :  { %v391_v8 = vpack.c.b16 %v390_v7, %v390_v7 }
 0x93d   :  { %v392_v9 = vrot.slane %v391_v8, 3 }
 0x93f   :  { %393 = vrot.lane.b32.xlu0 %v392_v9, %s1503_s23 }
 0x9b1   :  { %v394_v10 = vpop.permute.xlu0 %393 }
 0x9b2   :  { %1219 = vmatmul.msk.bf16.vlgmr.msrb.gmra.mxu0 %vm93_vm0, %v394_v10 }
 0xa2f   :  { %v407_v13 = vpop.f32.mrf.mxu0 }
 0xa30   :  { %v411_v14 = vadd.f32 %v407_v13, %v1598_v12 }
 0xa32   :  { %v1220_v15 = vmul.f32 -1.442695, %v411_v14 }
 0xa34   :  { %1340 = vpow2.f32 %v1220_v15 }
 0xa37   :  { %v409_v16 = vpop.f32.mrf.mxu0 }
 0xa3a   :  { %v1341_v17 = vpop.eup %1340 }
 0xa3b   :  { %v415_v18 = vadd.f32 1.0, %v1341_v17 }
 0xa3d   :  { %1342 = vrcp.f32 %v415_v18  ;;  %v427_v22 = vand.u32 2147483648, %v415_v18  ;;  %v425_v24 = vand.u32 2147483647, %v415_v18  ;;  %vm421_vm3 = vweird.f32 %v415_v18 }
 0xa3f   :  { %v428_v3 = vor.u32 1.1754944e-38, %v427_v22  ;;  %vm426_vm5 = vcmp.eq.f32.partialorder %v425_v24, 8.507059e+37 }
 0xa43   :  { %v1343_v19 = vpop.eup %1342 }
 0xa44   :  { %v417_v20 = vmul.f32 %v1343_v19, %v415_v18  ;;  %vm422_vm2 = vweird.f32 %v1343_v19 }
 0xa45   :  { %vm423_vm4 = vmor %vm421_vm3, %vm422_vm2  ;;  %vm158_vm3 = vcmask 253952  }
 0xa46   :  { %v418_v21 = vsub.f32 1.0, %v417_v20 }
 0xa48   :  { %v419_v23 = vmul.f32 %v1343_v19, %v418_v21 }
 0xa4a   :  { %v420_v25 = vadd.f32 %v1343_v19, %v419_v23 }
 0xa4c   :  { %v424_v26 = vsel %vm423_vm4, %v1343_v19, %v420_v25  ;;  %vm388_vm4 = vcmask 257027  }
 0xa4d   :  { %v429_v27 = vsel %vm426_vm5, %v428_v3, %v424_v26  ;;  %vm315_vm5 = vcmask 256002  }
 0xa4e   :  { %v431_v28 = vmul.f32 2.0, %v429_v27  ;;  %v436_v34 = vmul.f32 %v434_v33, %v429_v27 }
 0xa50   :  { %v1221_v29 = vadd.f32 -1.0, %v431_v28 }
 0xa52   :  { %438 = vrot.lane.b32.xlu1 %v1221_v29, %s1507_s5 }
 0xac4   :  { %v439_v30 = vpop.permute.xlu1 %438 }
 0xac5   :  { %v441_v32 = vmul.f32 %v439_v30, %v429_v27 }
 0xac7   :  { %443 = vrot.lane.b32.xlu2 %v441_v32, %s1507_s5 }
 0xb21   :  { %v444_v36 = vpop.permute.xlu2 %443 }
 0xb22   :  { %v446_v37 = vadd.f32 %v444_v36, %v436_v34 }
 0xb24   :  { %1344 = vtanh.f32 %v446_v37  ;;  %v505_v2 = vrot.slane %v446_v37, 6 }
 0xb2a   :  { %v1345_v38 = vpop.eup %1344 }
 0xb2b   :  { %449 = vrot.lane.b32.xlu0 %v1345_v38, %s1507_s5 }
 0xb9d   :  { %v450_v39 = vpop.permute.xlu0 %449 }
 0xb9e   :  { %v452_v40 = vmul.f32 %v450_v39, %v429_v27 }
 0xba0   :  { %v1604_v41 = vpack.c.bf16 %v452_v40, %v452_v40 }
 0xba2   :  { %v459_v42 = vunpack.c.l.b16 %v1604_v41 }
 0xba4   :  { %v460_v43 = vpack.c.b16 %v459_v42, %v459_v42 }
 0xba6   :  { %461 = vrot.lane.b32.xlu1 %v460_v43, %s1503_s23 }
 0xc18   :  { %v462_v44 = vpop.permute.xlu1 %461 }
 0xc19   :  { %1222 = vmatmul.msk.bf16.vlgmr.msrb.gmra.mxu1 %vm93_vm0, %v462_v44 }
 0xc96   :  { %v475_v45 = vpop.f32.mrf.mxu1 }
 0xc97   :  { %v480_v46 = vrot.slane %v475_v45, 6 }
 0xc99   :  { %v482_v47 = vadd.f32 %v480_v46, %v1598_v12 }
 0xc9b   :  { %v1223_v48 = vmul.f32 -1.442695, %v482_v47 }
 0xc9d   :  { %1346 = vpow2.f32 %v1223_v48 }
 0xc9e   :  { %v477_v49 = vpop.f32.mrf.mxu1 }
 0xca3   :  { %v1347_v50 = vpop.eup %1346 }
 0xca4   :  { %v486_v51 = vadd.f32 1.0, %v1347_v50 }
 0xca6   :  { %1348 = vrcp.f32 %v486_v51  ;;  %v498_v55 = vand.u32 2147483648, %v486_v51  ;;  %v496_v56 = vand.u32 2147483647, %v486_v51  ;;  %vm492_vm7 = vweird.f32 %v486_v51 }
 0xca8   :  { %v499_v58 = vor.u32 1.1754944e-38, %v498_v55  ;;  %vm497_vm9 = vcmp.eq.f32.partialorder %v496_v56, 8.507059e+37 }
 0xcac   :  { %v1349_v52 = vpop.eup %1348 }
 0xcad   :  { %v488_v53 = vmul.f32 %v1349_v52, %v486_v51  ;;  %vm493_vm6 = vweird.f32 %v1349_v52 }
 0xcae   :  { %vm494_vm8 = vmor %vm492_vm7, %vm493_vm6  ;;  %vm242_vm6 = vcmask 254977  }
 0xcaf   :  { %v489_v54 = vsub.f32 1.0, %v488_v53 }
 0xcb1   :  { %v490_v5 = vmul.f32 %v1349_v52, %v489_v54 }
 0xcb3   :  { %v491_v57 = vadd.f32 %v1349_v52, %v490_v5 }
 0xcb5   :  { %v495_v59 = vsel %vm494_vm8, %v1349_v52, %v491_v57 }
 0xcb6   :  { %v500_v60 = vsel %vm497_vm9, %v499_v58, %v495_v59 }
 0xcb7   :  { %v502_v61 = vmul.f32 2.0, %v500_v60  ;;  %v507_v4 = vmul.f32 %v505_v2, %v500_v60 }
 0xcb9   :  { %v1224_v62 = vadd.f32 -1.0, %v502_v61 }
 0xcbb   :  { %509 = vrot.lane.b32.xlu2 %v1224_v62, %s1507_s5 }
 0xd15   :  { %v510_v0 = vpop.permute.xlu2 %509 }
 0xd16   :  { %v512_v1 = vmul.f32 %v510_v0, %v500_v60 }
 0xd18   :  { %514 = vrot.lane.b32.xlu0 %v512_v1, %s1507_s5 }
 0xd8a   :  { %v515_v7 = vpop.permute.xlu0 %514 }
 0xd8b   :  { %v517_v8 = vadd.f32 %v515_v7, %v507_v4 }
 0xd8d   :  { %1350 = vtanh.f32 %v517_v8  ;;  %v577_v40 = vrot.slane %v517_v8, 6 }
 0xd93   :  { %v1351_v9 = vpop.eup %1350 }
 0xd94   :  { %520 = vrot.lane.b32.xlu1 %v1351_v9, %s1507_s5 }
 0xe06   :  { %v521_v10 = vpop.permute.xlu1 %520 }
 0xe07   :  { %v523_v11 = vmul.f32 %v521_v10, %v500_v60 }
 0xe09   :  { %v1613_v13 = vpack.c.bf16 %v523_v11, %v523_v11 }
 0xe0b   :  { %v530_v14 = vunpack.c.l.b16 %v1613_v13 }
 0xe0d   :  { %v531_v15 = vpack.c.b16 %v530_v14, %v530_v14 }
 0xe0f   :  { %v532_v16 = vrot.slane %v531_v15, 1 }
 0xe11   :  { %533 = vrot.lane.b32.xlu2 %v532_v16, %s1503_s23 }
 0xe6b   :  { %v534_v17 = vpop.permute.xlu2 %533 }
 0xe6c   :  { %1225 = vmatmul.msk.bf16.vlgmr.msrb.gmra.mxu2 %vm93_vm0, %v534_v17 }
 0xeef   :  { %v547_v18 = vpop.f32.mrf.mxu2 }
 0xef0   :  { %v552_v19 = vrot.slane %v547_v18, 4 }
 0xef2   :  { %v554_v20 = vadd.f32 %v552_v19, %v1598_v12 }
 0xef4   :  { %v1226_v21 = vmul.f32 -1.442695, %v554_v20 }
 0xef6   :  { %1352 = vpow2.f32 %v1226_v21 }
 0xef7   :  { %v549_v22 = vpop.f32.mrf.mxu2 }
 0xefc   :  { %v1353_v23 = vpop.eup %1352 }
 0xefd   :  { %v558_v24 = vadd.f32 1.0, %v1353_v23 }
 0xeff   :  { %1354 = vrcp.f32 %v558_v24  ;;  %v570_v27 = vand.u32 2147483648, %v558_v24  ;;  %v568_v29 = vand.u32 2147483647, %v558_v24  ;;  %vm564_vm11 = vweird.f32 %v558_v24 }
 0xf01   :  { %v571_v32 = vor.u32 1.1754944e-38, %v570_v27  ;;  %vm569_vm13 = vcmp.eq.f32.partialorder %v568_v29, 8.507059e+37 }
 0xf05   :  { %v1355_v25 = vpop.eup %1354 }
 0xf06   :  { %v560_v3 = vmul.f32 %v1355_v25, %v558_v24  ;;  %vm565_vm10 = vweird.f32 %v1355_v25 }
 0xf07   :  { %vm566_vm12 = vmor %vm564_vm11, %vm565_vm10 }
 0xf08   :  { %v561_v26 = vsub.f32 1.0, %v560_v3  ;;  %v1297_v3 = vld [vmem:[#allocation6 + $0x10] sm:$0xff] }
 0xf0a   :  { %v562_v28 = vmul.f32 %v1355_v25, %v561_v26 }
 0xf0c   :  { %v563_v30 = vadd.f32 %v1355_v25, %v562_v28 }
 0xf0e   :  { %v567_v33 = vsel %vm566_vm12, %v1355_v25, %v563_v30 }
 0xf0f   :  { %v572_v34 = vsel %vm569_vm13, %v571_v32, %v567_v33 }
 0xf10   :  { %v574_v36 = vmul.f32 2.0, %v572_v34  ;;  %v579_v42 = vmul.f32 %v577_v40, %v572_v34 }
 0xf12   :  { %v1227_v37 = vadd.f32 -1.0, %v574_v36 }
 0xf14   :  { %581 = vrot.lane.b32.xlu0 %v1227_v37, %s1507_s5 }
 0xf86   :  { %v582_v38 = vpop.permute.xlu0 %581 }
 0xf87   :  { %v584_v39 = vmul.f32 %v582_v38, %v572_v34 }
 0xf89   :  { %586 = vrot.lane.b32.xlu1 %v584_v39, %s1507_s5 }
 0xffb   :  { %v587_v43 = vpop.permute.xlu1 %586 }
 0xffc   :  { %v589_v44 = vadd.f32 %v587_v43, %v579_v42 }
 0xffe   :  { %1356 = vtanh.f32 %v589_v44 }
0x1004   :  { %v1357_v45 = vpop.eup %1356 }
0x1005   :  { %592 = vrot.lane.b32.xlu2 %v1357_v45, %s1507_s5 }
0x105f   :  { %v593_v46 = vpop.permute.xlu2 %592 }
0x1060   :  { %v595_v47 = vmul.f32 %v593_v46, %v572_v34 }
0x1062   :  { %v596_v48 = vpack.c.bf16 %v595_v47, %v595_v47 }
0x1064   :  { %v602_v49 = vunpack.c.l.b16 %v596_v48 }
0x1066   :  { %v603_v50 = vpack.c.b16 %v602_v49, %v602_v49 }
0x1068   :  { %v604_v51 = vrot.slane %v603_v50, 2 }
0x106a   :  { %605 = vrot.lane.b32.xlu0 %v604_v51, %s1503_s23 }
0x10dc   :  { %v606_v52 = vpop.permute.xlu0 %605 }
0x10dd   :  { %1228 = vmatmul.msk.bf16.vlgmr.msrb.gmra.mxu3 %vm93_vm0, %v606_v52 }
0x1160   :  { %v619_v53 = vpop.f32.mrf.mxu3 }
0x1161   :  { %v624_v54 = vrot.slane %v619_v53, 2  ;;  %v1300_v53 = vld [vmem:[#allocation8 + $0x18] sm:$0xff] }
0x1162   :  { %795 = vmatpush.bf16.msra.mxu1 %v1300_v53  ;;  %868 = vmatpush.bf16.msra.mxu2 %v1300_v53 }
0x1163   :  { %v626_v55 = vadd.f32 %v624_v54, %v1598_v12  ;;  %v1299_v54 = vld [vmem:[#allocation8 + $0x10] sm:$0xff]  ;;  %936 = vmatpush.bf16.msra.mxu3 %v1300_v53 }
0x1165   :  { %v1229_v5 = vmul.f32 -1.442695, %v626_v55 }
0x1166   :  { %796 = vmatpush.bf16.msra.mxu1 %v1299_v54  ;;  %869 = vmatpush.bf16.msra.mxu2 %v1299_v54 }
0x1167   :  { %1358 = vpow2.f32 %v1229_v5  ;;  %937 = vmatpush.bf16.msra.mxu3 %v1299_v54 }
0x1168   :  { %v621_v56 = vpop.f32.mrf.mxu3 }
0x116d   :  { %v1359_v57 = vpop.eup %1358 }
0x116e   :  { %v630_v58 = vadd.f32 1.0, %v1359_v57 }
0x1170   :  { %1360 = vrcp.f32 %v630_v58  ;;  %v642_v62 = vand.u32 2147483648, %v630_v58  ;;  %v640_v1 = vand.u32 2147483647, %v630_v58  ;;  %vm636_vm15 = vweird.f32 %v630_v58 }
0x1172   :  { %v643_v4 = vor.u32 1.1754944e-38, %v642_v62  ;;  %vm641_vm2 = vcmp.eq.f32.partialorder %v640_v1, 8.507059e+37 }
0x1176   :  { %v1361_v59 = vpop.eup %1360 }
0x1177   :  { %v632_v60 = vmul.f32 %v1361_v59, %v630_v58  ;;  %vm637_vm14 = vweird.f32 %v1361_v59 }
0x1178   :  { %vm638_vm1 = vmor %vm636_vm15, %vm637_vm14 }
0x1179   :  { %v633_v61 = vsub.f32 1.0, %v632_v60 }
0x117b   :  { %v634_v0 = vmul.f32 %v1361_v59, %v633_v61 }
0x117d   :  { %v635_v2 = vadd.f32 %v1361_v59, %v634_v0 }
0x117f   :  { %v639_v7 = vsel %vm638_vm1, %v1361_v59, %v635_v2 }
0x1180   :  { %v644_v12 = vsel %vm641_vm2, %v643_v4, %v639_v7 }
0x1181   :  { %v646_v8 = vmul.f32 2.0, %v644_v12 }
0x1183   :  { %v1230_v9 = vadd.f32 -1.0, %v646_v8 }
0x1185   :  { %653 = vrot.lane.b32.xlu1 %v1230_v9, %s1507_s5 }
0x118d   :  { %155 = vrot.lane.b32.xlu1 %v1565_v31, %s1503_s23 }
0x1195   :  { %385 = vrot.lane.b32.xlu1 %v1592_v6, %s1503_s23  ;;  %v649_v6 = vrot.slane %v589_v44, 6 }
0x1197   :  { %v651_v16 = vmul.f32 %v649_v6, %v644_v12 }
0x119d   :  { %598 = vrot.lane.b32.xlu1 %v596_v48, %s1503_s23 }
0x11f7   :  { %v654_v10 = vpop.permute.xlu1 %653 }
0x11f8   :  { %v656_v11 = vmul.f32 %v654_v10, %v644_v12 }
0x11fa   :  { %658 = vrot.lane.b32.xlu2 %v656_v11, %s1507_s5 }
0x11ff   :  { %v156_v14 = vpop.permute.xlu1 %155 }
0x1200   :  { %159 = vst.msk [vmem:[#allocation2] sm:$0x1] %vm158_vm3, %v156_v14 }
0x1202   :  { %239 = vrot.lane.b32.xlu2 %v1574_v63, %s1503_s23 }
0x1207   :  { %v386_v15 = vpop.permute.xlu1 %385 }
0x1208   :  { %389 = vst.msk [vmem:[#allocation2] sm:$0x8] %vm388_vm4, %v386_v15 }
0x120a   :  { %455 = vrot.lane.b32.xlu2 %v1604_v41, %s1503_s23  ;;  %v1298_v41 = vld [vmem:[#allocation6 + $0x18] sm:$0xff] }
0x120b   :  { %712 = vmatpush.bf16.msra.mxu0 %v1298_v41 }
0x120f   :  { %v599_v31 = vpop.permute.xlu1 %598  ;;  %713 = vmatpush.bf16.msra.mxu0 %v1297_v3 }
0x1210   :  { %601 = vst.msk [vmem:[#allocation2 + $0x4] sm:$0x4] %vm315_vm5, %v599_v31 }
0x1254   :  { %v659_v17 = vpop.permute.xlu2 %658 }
0x1255   :  { %v661_v18 = vadd.f32 %v659_v17, %v651_v16 }
0x1257   :  { %1362 = vtanh.f32 %v661_v18 }
0x125c   :  { %v240_v19 = vpop.permute.xlu2 %239 }
0x125d   :  { %v1363_v20 = vpop.eup %1362  ;;  %243 = vst.msk [vmem:[#allocation2] sm:$0x2] %vm242_vm6, %v240_v19 }
0x125e   :  { %664 = vrot.lane.b32.xlu0 %v1363_v20, %s1507_s5 }
0x1264   :  { %v456_v63 = vpop.permute.xlu2 %455 }
0x1265   :  { %458 = vst.msk [vmem:[#allocation2 + $0x4] sm:$0x1] %vm158_vm3, %v456_v63 }
0x1266   :  { %312 = vrot.lane.b32.xlu0 %v1583_v35, %s1503_s23 }
0x126e   :  { %526 = vrot.lane.b32.xlu0 %v1613_v13, %s1503_s23  ;;  %v1654_v13 = vld [vmem:[%s1717_s3 + $0x1] ss:$0 sm:$0xff] }
0x12d0   :  { %v665_v21 = vpop.permute.xlu0 %664 }
0x12d1   :  { %v667_v22 = vmul.f32 %v665_v21, %v644_v12 }
0x12d3   :  { %v668_v23 = vpack.c.bf16 %v667_v22, %v667_v22 }
0x12d5   :  { %670 = vrot.lane.b32.xlu2 %v668_v23, %s1503_s23 }
0x12d8   :  { %v313_v24 = vpop.permute.xlu0 %312 }
0x12d9   :  { %316 = vst.msk [vmem:[#allocation2] sm:$0x4] %vm315_vm5, %v313_v24 }
0x12e0   :  { %v527_v25 = vpop.permute.xlu0 %526 }
0x12e1   :  { %529 = vst.msk [vmem:[#allocation2 + $0x4] sm:$0x2] %vm242_vm6, %v527_v25 }
0x132f   :  { %v671_v26 = vpop.permute.xlu2 %670 }
0x1330   :  { %673 = vst.msk [vmem:[#allocation2 + $0x4] sm:$0x8] %vm388_vm4, %v671_v26 }
0x1337   :  { %v1296_v35 = vld [vmem:[#allocation2] sm:$0xff] }
0x1338   :  { %1244 = vmatmul.msk.bf16.vlgmr.msra.gmra.mxu0 %vm93_vm0, %v1296_v35 }
0x13b5   :  { %v715_v27 = vpop.f32.mrf.mxu0 }
0x13b6   :  { %v716_v28 = vadd.f32 %v1654_v13, %v715_v27 }
0x13b8   :  { %v1245_v29 = vmul.f32 -1.442695, %v716_v28 }
0x13ba   :  { %1364 = vpow2.f32 %v1245_v29 }
0x13c0   :  { %v1365_v30 = vpop.eup %1364 }
0x13c1   :  { %v728_v32 = vadd.f32 1.0, %v1365_v30 }
0x13c3   :  { %1366 = vrcp.f32 %v728_v32  ;;  %v740_v37 = vand.u32 2147483648, %v728_v32  ;;  %v738_v39 = vand.u32 2147483647, %v728_v32  ;;  %vm734_vm8 = vweird.f32 %v728_v32 }
0x13c5   :  { %v741_v42 = vor.u32 1.1754944e-38, %v740_v37  ;;  %vm739_vm10 = vcmp.eq.f32.partialorder %v738_v39, 8.507059e+37 }
0x13c9   :  { %v1367_v33 = vpop.eup %1366 }
0x13ca   :  { %v730_v34 = vmul.f32 %v1367_v33, %v728_v32  ;;  %vm735_vm7 = vweird.f32 %v1367_v33 }
0x13cb   :  { %vm736_vm9 = vmor %vm734_vm8, %vm735_vm7  ;;  %vm768_vm8 = vcmask 254976  }
0x13cc   :  { %v731_v36 = vsub.f32 1.0, %v730_v34 }
0x13ce   :  { %v732_v38 = vmul.f32 %v1367_v33, %v731_v36 }
0x13d0   :  { %v733_v40 = vadd.f32 %v1367_v33, %v732_v38 }
0x13d2   :  { %v737_v43 = vsel %vm736_vm9, %v1367_v33, %v733_v40  ;;  %vm852_vm9 = vcmask 257026  }
0x13d3   :  { %v742_v44 = vsel %vm739_vm10, %v741_v42, %v737_v43 }
0x13d4   :  { %v744_v45 = vmul.f32 2.0, %v742_v44  ;;  %v746_v49 = vmul.f32 0.0, %v742_v44 }
0x13d6   :  { %v1246_v46 = vadd.f32 -1.0, %v744_v45 }
0x13d8   :  { %748 = vrot.lane.b32.xlu0 %v1246_v46, %s1507_s5 }
0x144a   :  { %v749_v47 = vpop.permute.xlu0 %748 }
0x144b   :  { %v751_v48 = vmul.f32 %v749_v47, %v742_v44 }
0x144d   :  { %753 = vrot.lane.b32.xlu1 %v751_v48, %s1507_s5 }
0x14bf   :  { %v754_v50 = vpop.permute.xlu1 %753 }
0x14c0   :  { %v756_v51 = vadd.f32 %v754_v50, %v746_v49 }
0x14c2   :  { %1368 = vtanh.f32 %v756_v51  ;;  %v828_v20 = vrot.slane %v756_v51, 4 }
0x14c8   :  { %v1369_v52 = vpop.eup %1368 }
0x14c9   :  { %759 = vrot.lane.b32.xlu2 %v1369_v52, %s1507_s5 }
0x1523   :  { %v760_v55 = vpop.permute.xlu2 %759 }
0x1524   :  { %v762_v5 = vmul.f32 %v760_v55, %v742_v44 }
0x1526   :  { %v1660_v56 = vpack.c.bf16 %v762_v5, %v762_v5 }
0x1528   :  { %v770_v57 = vunpack.c.l.b16 %v1660_v56 }
0x152a   :  { %v771_v58 = vpack.c.b16 %v770_v57, %v770_v57 }
0x152c   :  { %772 = vrot.lane.b32.xlu0 %v771_v58, %s1503_s23 }
0x159e   :  { %v773_v59 = vpop.permute.xlu0 %772 }
0x159f   :  { %1255 = vmatmul.msk.bf16.vlgmr.msra.gmra.mxu1 %vm93_vm0, %v773_v59 }
0x161c   :  { %v798_v60 = vpop.f32.mrf.mxu1 }
0x161d   :  { %v803_v61 = vrot.slane %v798_v60, 4 }
0x161f   :  { %v805_v62 = vadd.f32 %v803_v61, %v716_v28  ;;  %v717_v28 = vpop.f32.mrf.mxu0 }
0x1620   :  { %v718_v29 = vadd.f32 %v1654_v13, %v717_v28 }
0x1621   :  { %v1256_v0 = vmul.f32 -1.442695, %v805_v62 }
0x1623   :  { %1370 = vpow2.f32 %v1256_v0 }
0x1624   :  { %v800_v1 = vpop.f32.mrf.mxu1 }
0x1629   :  { %v1371_v2 = vpop.eup %1370 }
0x162a   :  { %v809_v4 = vadd.f32 1.0, %v1371_v2 }
0x162c   :  { %1372 = vrcp.f32 %v809_v4  ;;  %v821_v9 = vand.u32 2147483648, %v809_v4  ;;  %v819_v11 = vand.u32 2147483647, %v809_v4  ;;  %vm815_vm12 = vweird.f32 %v809_v4 }
0x162e   :  { %v822_v15 = vor.u32 1.1754944e-38, %v821_v9  ;;  %vm820_vm14 = vcmp.eq.f32.partialorder %v819_v11, 8.507059e+37 }
0x1632   :  { %v1373_v7 = vpop.eup %1372 }
0x1633   :  { %v811_v12 = vmul.f32 %v1373_v7, %v809_v4  ;;  %vm816_vm11 = vweird.f32 %v1373_v7 }
0x1634   :  { %vm817_vm13 = vmor %vm815_vm12, %vm816_vm11 }
0x1635   :  { %v812_v8 = vsub.f32 1.0, %v811_v12 }
0x1637   :  { %v813_v10 = vmul.f32 %v1373_v7, %v812_v8 }
0x1639   :  { %v814_v14 = vadd.f32 %v1373_v7, %v813_v10 }
0x163b   :  { %v818_v31 = vsel %vm817_vm13, %v1373_v7, %v814_v14 }
0x163c   :  { %v823_v6 = vsel %vm820_vm14, %v822_v15, %v818_v31 }
0x163d   :  { %v825_v16 = vmul.f32 2.0, %v823_v6  ;;  %v830_v63 = vmul.f32 %v828_v20, %v823_v6 }
0x163f   :  { %v1257_v17 = vadd.f32 -1.0, %v825_v16 }
0x1641   :  { %832 = vrot.lane.b32.xlu1 %v1257_v17, %s1507_s5 }
0x16b3   :  { %v833_v18 = vpop.permute.xlu1 %832 }
0x16b4   :  { %v835_v19 = vmul.f32 %v833_v18, %v823_v6 }
0x16b6   :  { %837 = vrot.lane.b32.xlu2 %v835_v19, %s1507_s5 }
0x1710   :  { %v838_v41 = vpop.permute.xlu2 %837 }
0x1711   :  { %v840_v21 = vadd.f32 %v838_v41, %v830_v63 }
0x1713   :  { %1374 = vtanh.f32 %v840_v21  ;;  %v898_v52 = vrot.slane %v840_v21, 4 }
0x1719   :  { %v1375_v22 = vpop.eup %1374 }
0x171a   :  { %843 = vrot.lane.b32.xlu0 %v1375_v22, %s1507_s5 }
0x178c   :  { %v844_v23 = vpop.permute.xlu0 %843 }
0x178d   :  { %v846_v24 = vmul.f32 %v844_v23, %v823_v6 }
0x178f   :  { %v1668_v25 = vpack.c.bf16 %v846_v24, %v846_v24 }
0x1791   :  { %v854_v3 = vunpack.c.l.b16 %v1668_v25 }
0x1793   :  { %v855_v26 = vpack.c.b16 %v854_v3, %v854_v3 }
0x1795   :  { %v856_v35 = vrot.slane %v855_v26, 2 }
0x1797   :  { %857 = vrot.lane.b32.xlu1 %v856_v35, %s1503_s23 }
0x1809   :  { %v858_v27 = vpop.permute.xlu1 %857 }
0x180a   :  { %1258 = vmatmul.msk.bf16.vlgmr.msra.gmra.mxu2 %vm93_vm0, %v858_v27 }
0x188d   :  { %v871_v30 = vpop.f32.mrf.mxu2 }
0x188e   :  { %v875_v32 = vadd.f32 %v871_v30, %v718_v29  ;;  %v1302_v30 = vld [vmem:[#allocation6 + $0x20] sm:$0xff] }
0x1890   :  { %v1259_v33 = vmul.f32 -1.442695, %v875_v32 }
0x1892   :  { %1376 = vpow2.f32 %v1259_v33 }
0x1895   :  { %v873_v34 = vpop.f32.mrf.mxu2 }
0x1896   :  { %v1315_v34 = vld [vmem:[%s1717_s3 + $0x2] ss:$0 sm:$0xff]  ;;  %s1508_s3 = smov [#allocation9]  }
0x1897   :  { %s1171_s10 = sshll.u32 %s1508_s3, 4  ;;  %s1172_s10 = int_to_ptr.vmem [resolvable:$true] %s1171_s10 }
0x1898   :  { %v1377_v36 = vpop.eup %1376 }
0x1899   :  { %v879_v37 = vadd.f32 1.0, %v1377_v36 }
0x189b   :  { %1378 = vrcp.f32 %v879_v37  ;;  %v891_v42 = vand.u32 2147483648, %v879_v37  ;;  %v889_v44 = vand.u32 2147483647, %v879_v37  ;;  %vm885_vm1 = vweird.f32 %v879_v37 }
0x189d   :  { %v892_v46 = vor.u32 1.1754944e-38, %v891_v42  ;;  %vm890_vm3 = vcmp.eq.f32.partialorder %v889_v44, 8.507059e+37 }
0x18a1   :  { %v1379_v38 = vpop.eup %1378 }
0x18a2   :  { %v881_v39 = vmul.f32 %v1379_v38, %v879_v37  ;;  %vm886_vm15 = vweird.f32 %v1379_v38 }
0x18a3   :  { %vm887_vm2 = vmor %vm885_vm1, %vm886_vm15 }
0x18a4   :  { %v882_v40 = vsub.f32 1.0, %v881_v39 }
0x18a6   :  { %v883_v43 = vmul.f32 %v1379_v38, %v882_v40 }
0x18a8   :  { %v884_v45 = vadd.f32 %v1379_v38, %v883_v43 }
0x18aa   :  { %v888_v13 = vsel %vm887_vm2, %v1379_v38, %v884_v45  ;;  %vm1088_vm2 = vcmask 257024  }
0x18ab   :  { %v893_v47 = vsel %vm890_vm3, %v892_v46, %v888_v13 }
0x18ac   :  { %v895_v48 = vmul.f32 2.0, %v893_v47  ;;  %v900_v53 = vmul.f32 %v898_v52, %v893_v47 }
0x18ae   :  { %v1260_v49 = vadd.f32 -1.0, %v895_v48 }
0x18b0   :  { %902 = vrot.lane.b32.xlu2 %v1260_v49, %s1507_s5 }
0x190a   :  { %v903_v50 = vpop.permute.xlu2 %902 }
0x190b   :  { %v905_v51 = vmul.f32 %v903_v50, %v893_v47 }
0x190d   :  { %907 = vrot.lane.b32.xlu0 %v905_v51, %s1507_s5 }
0x197f   :  { %v908_v54 = vpop.permute.xlu0 %907 }
0x1980   :  { %v910_v55 = vadd.f32 %v908_v54, %v900_v53 }
0x1982   :  { %1380 = vtanh.f32 %v910_v55  ;;  %v969_v22 = vrot.slane %v910_v55, 4 }
0x1988   :  { %v1381_v5 = vpop.eup %1380 }
0x1989   :  { %913 = vrot.lane.b32.xlu1 %v1381_v5, %s1507_s5 }
0x19fb   :  { %v914_v57 = vpop.permute.xlu1 %913 }
0x19fc   :  { %v916_v58 = vmul.f32 %v914_v57, %v893_v47 }
0x19fe   :  { %v917_v59 = vpack.c.bf16 %v916_v58, %v916_v58 }
0x1a00   :  { %v923_v60 = vunpack.c.l.b16 %v917_v59 }
0x1a02   :  { %v924_v61 = vpack.c.b16 %v923_v60, %v923_v60  ;;  %v1304_v60 = vld [vmem:[#allocation8 + $0x20] sm:$0xff] }
0x1a04   :  { %925 = vrot.lane.b32.xlu2 %v924_v61, %s1503_s23 }
0x1a5e   :  { %v926_v62 = vpop.permute.xlu2 %925 }
0x1a5f   :  { %1261 = vmatmul.msk.bf16.vlgmr.msra.gmra.mxu3 %vm93_vm0, %v926_v62 }
0x1ae2   :  { %v939_v0 = vpop.f32.mrf.mxu3 }
0x1ae3   :  { %v944_v1 = vrot.slane %v939_v0, 4 }
0x1ae5   :  { %v946_v2 = vadd.f32 %v944_v1, %v718_v29 }
0x1ae7   :  { %v1262_v4 = vmul.f32 -1.442695, %v946_v2 }
0x1ae9   :  { %1382 = vpow2.f32 %v1262_v4 }
0x1aea   :  { %v941_v7 = vpop.f32.mrf.mxu3 }
0x1aef   :  { %v1383_v12 = vpop.eup %1382 }
0x1af0   :  { %v950_v8 = vadd.f32 1.0, %v1383_v12 }
0x1af2   :  { %1384 = vrcp.f32 %v950_v8  ;;  %v962_v14 = vand.u32 2147483648, %v950_v8  ;;  %v960_v31 = vand.u32 2147483647, %v950_v8  ;;  %vm956_vm5 = vweird.f32 %v950_v8 }
0x1af4   :  { %v963_v16 = vor.u32 1.1754944e-38, %v962_v14  ;;  %vm961_vm7 = vcmp.eq.f32.partialorder %v960_v31, 8.507059e+37 }
0x1af8   :  { %v1385_v9 = vpop.eup %1384 }
0x1af9   :  { %v952_v10 = vmul.f32 %v1385_v9, %v950_v8  ;;  %vm957_vm4 = vweird.f32 %v1385_v9 }
0x1afa   :  { %vm958_vm6 = vmor %vm956_vm5, %vm957_vm4 }
0x1afb   :  { %v953_v11 = vsub.f32 1.0, %v952_v10 }
0x1afd   :  { %v954_v15 = vmul.f32 %v1385_v9, %v953_v11 }
0x1aff   :  { %v955_v6 = vadd.f32 %v1385_v9, %v954_v15 }
0x1b01   :  { %v959_v17 = vsel %vm958_vm6, %v1385_v9, %v955_v6 }
0x1b02   :  { %v964_v18 = vsel %vm961_vm7, %v963_v16, %v959_v17 }
0x1b03   :  { %v966_v19 = vmul.f32 2.0, %v964_v18  ;;  %v971_v23 = vmul.f32 %v969_v22, %v964_v18 }
0x1b05   :  { %v1263_v20 = vadd.f32 -1.0, %v966_v19 }
0x1b07   :  { %973 = vrot.lane.b32.xlu0 %v1263_v20, %s1507_s5 }
0x1b0f   :  { %765 = vrot.lane.b32.xlu0 %v1660_v56, %s1503_s23  ;;  %v1303_v56 = vld [vmem:[#allocation6 + $0x28] sm:$0xff] }
0x1b10   :  { %1032 = vmatpush.bf16.msrb.mxu0 %v1303_v56 }
0x1b14   :  { %1033 = vmatpush.bf16.msrb.mxu0 %v1302_v30 }
0x1b79   :  { %v974_v63 = vpop.permute.xlu0 %973 }
0x1b7a   :  { %v976_v41 = vmul.f32 %v974_v63, %v964_v18 }
0x1b7c   :  { %978 = vrot.lane.b32.xlu1 %v976_v41, %s1507_s5 }
0x1b81   :  { %v766_v21 = vpop.permute.xlu0 %765 }
0x1b82   :  { %769 = vst.msk [vmem:[#allocation2] sm:$0x3] %vm768_vm8, %v766_v21 }
0x1b84   :  { %849 = vrot.lane.b32.xlu1 %v1668_v25, %s1503_s23 }
0x1bee   :  { %v979_v24 = vpop.permute.xlu1 %978 }
0x1bef   :  { %v981_v3 = vadd.f32 %v979_v24, %v971_v23 }
0x1bf1   :  { %1386 = vtanh.f32 %v981_v3 }
0x1bf6   :  { %v850_v26 = vpop.permute.xlu1 %849 }
0x1bf7   :  { %v1387_v35 = vpop.eup %1386  ;;  %853 = vst.msk [vmem:[#allocation2] sm:$0xc] %vm852_vm9, %v850_v26 }
0x1bf8   :  { %984 = vrot.lane.b32.xlu2 %v1387_v35, %s1507_s5 }
0x1c00   :  { %919 = vrot.lane.b32.xlu2 %v917_v59, %s1503_s23  ;;  %v1305_v59 = vld [vmem:[#allocation8 + $0x28] sm:$0xff] }
0x1c01   :  { %1115 = vmatpush.bf16.msrb.mxu1 %v1305_v59 }
0x1c05   :  { %1116 = vmatpush.bf16.msrb.mxu1 %v1304_v60 }
0x1c52   :  { %v985_v27 = vpop.permute.xlu2 %984 }
0x1c53   :  { %v987_v28 = vmul.f32 %v985_v27, %v964_v18 }
0x1c55   :  { %v988_v29 = vpack.c.bf16 %v987_v28, %v987_v28 }
0x1c57   :  { %990 = vrot.lane.b32.xlu0 %v988_v29, %s1503_s23 }
0x1c5a   :  { %v920_v25 = vpop.permute.xlu2 %919 }
0x1c5b   :  { %922 = vst.msk [vmem:[#allocation2 + $0x4] sm:$0x3] %vm768_vm8, %v920_v25 }
0x1cc9   :  { %v991_v32 = vpop.permute.xlu0 %990 }
0x1cca   :  { %993 = vst.msk [vmem:[#allocation2 + $0x4] sm:$0xc] %vm852_vm9, %v991_v32 }
0x1cd1   :  { %v1301_v33 = vld [vmem:[#allocation2] sm:$0xff] }
0x1cd2   :  { %1277 = vmatmul.msk.bf16.vlgmr.msrb.gmra.mxu0 %vm93_vm0, %v1301_v33 }
0x1d4f   :  { %v1035_v36 = vpop.f32.mrf.mxu0 }
0x1d50   :  { %v1036_v37 = vadd.f32 %v1315_v34, %v1035_v36 }
0x1d52   :  { %v1278_v38 = vmul.f32 -1.442695, %v1036_v37 }
0x1d54   :  { %1388 = vpow2.f32 %v1278_v38 }
0x1d57   :  { %v1037_v7 = vpop.f32.mrf.mxu0 }
0x1d58   :  { %v1038_v12 = vadd.f32 %v1315_v34, %v1037_v7 }
0x1d5a   :  { %v1389_v39 = vpop.eup %1388 }
0x1d5b   :  { %v1048_v40 = vadd.f32 1.0, %v1389_v39 }
0x1d5d   :  { %1390 = vrcp.f32 %v1048_v40  ;;  %v1060_v45 = vand.u32 2147483648, %v1048_v40  ;;  %v1058_v13 = vand.u32 2147483647, %v1048_v40  ;;  %vm1054_vm11 = vweird.f32 %v1048_v40 }
0x1d5f   :  { %v1061_v48 = vor.u32 1.1754944e-38, %v1060_v45  ;;  %vm1059_vm13 = vcmp.eq.f32.partialorder %v1058_v13, 8.507059e+37 }
0x1d63   :  { %v1391_v42 = vpop.eup %1390 }
0x1d64   :  { %v1050_v43 = vmul.f32 %v1391_v42, %v1048_v40  ;;  %vm1055_vm10 = vweird.f32 %v1391_v42 }
0x1d65   :  { %vm1056_vm12 = vmor %vm1054_vm11, %vm1055_vm10 }
0x1d66   :  { %v1051_v44 = vsub.f32 1.0, %v1050_v43 }
0x1d68   :  { %v1052_v46 = vmul.f32 %v1391_v42, %v1051_v44 }
0x1d6a   :  { %v1053_v47 = vadd.f32 %v1391_v42, %v1052_v46 }
0x1d6c   :  { %v1057_v49 = vsel %vm1056_vm12, %v1391_v42, %v1053_v47 }
0x1d6d   :  { %v1062_v50 = vsel %vm1059_vm13, %v1061_v48, %v1057_v49 }
0x1d6e   :  { %v1064_v51 = vmul.f32 2.0, %v1062_v50  ;;  %v1066_v55 = vmul.f32 0.0, %v1062_v50 }
0x1d70   :  { %v1279_v52 = vadd.f32 -1.0, %v1064_v51 }
0x1d72   :  { %1068 = vrot.lane.b32.xlu1 %v1279_v52, %s1507_s5 }
0x1de4   :  { %v1069_v53 = vpop.permute.xlu1 %1068 }
0x1de5   :  { %v1071_v54 = vmul.f32 %v1069_v53, %v1062_v50 }
0x1de7   :  { %1073 = vrot.lane.b32.xlu2 %v1071_v54, %s1507_s5 }
0x1e41   :  { %v1074_v5 = vpop.permute.xlu2 %1073 }
0x1e42   :  { %v1076_v57 = vadd.f32 %v1074_v5, %v1066_v55 }
0x1e44   :  { %1392 = vtanh.f32 %v1076_v57 }
0x1e4a   :  { %v1393_v58 = vpop.eup %1392 }
0x1e4b   :  { %1079 = vrot.lane.b32.xlu0 %v1393_v58, %s1507_s5 }
0x1ebd   :  { %v1080_v61 = vpop.permute.xlu0 %1079 }
0x1ebe   :  { %v1082_v62 = vmul.f32 %v1080_v61, %v1062_v50 }
0x1ec0   :  { %v1083_v0 = vpack.c.bf16 %v1082_v62, %v1082_v62 }
0x1ec2   :  { %v1090_v1 = vunpack.c.l.b16 %v1083_v0 }
0x1ec4   :  { %v1091_v2 = vpack.c.b16 %v1090_v1, %v1090_v1 }
0x1ec6   :  { %1092 = vrot.lane.b32.xlu1 %v1091_v2, %s1503_s23 }
0x1f38   :  { %v1093_v4 = vpop.permute.xlu1 %1092 }
0x1f39   :  { %1288 = vmatmul.msk.bf16.vlgmr.msrb.gmra.mxu1 %vm93_vm0, %v1093_v4 }
0x1fb6   :  { %v1118_v8 = vpop.f32.mrf.mxu1 }
0x1fb7   :  { %v1122_v9 = vadd.f32 %v1118_v8, %v1038_v12 }
0x1fb9   :  { %v1289_v10 = vmul.f32 -1.442695, %v1122_v9 }
0x1fbb   :  { %1394 = vpow2.f32 %v1289_v10 }
0x1fbe   :  { %v1120_v11 = vpop.f32.mrf.mxu1 }
0x1fc1   :  { %v1395_v14 = vpop.eup %1394 }
0x1fc2   :  { %v1126_v15 = vadd.f32 1.0, %v1395_v14 }
0x1fc4   :  { %1396 = vrcp.f32 %v1126_v15  ;;  %v1138_v17 = vand.u32 2147483648, %v1126_v15  ;;  %v1136_v19 = vand.u32 2147483647, %v1126_v15  ;;  %vm1132_vm15 = vweird.f32 %v1126_v15 }
0x1fc6   :  { %v1139_v63 = vor.u32 1.1754944e-38, %v1138_v17  ;;  %vm1137_vm1 = vcmp.eq.f32.partialorder %v1136_v19, 8.507059e+37 }
0x1fca   :  { %v1397_v31 = vpop.eup %1396 }
0x1fcb   :  { %v1128_v6 = vmul.f32 %v1397_v31, %v1126_v15  ;;  %vm1133_vm14 = vweird.f32 %v1397_v31 }
0x1fcc   :  { %vm1134_vm0 = vmor %vm1132_vm15, %vm1133_vm14 }
0x1fcd   :  { %v1129_v16 = vsub.f32 1.0, %v1128_v6 }
0x1fcf   :  { %v1130_v18 = vmul.f32 %v1397_v31, %v1129_v16 }
0x1fd1   :  { %v1131_v20 = vadd.f32 %v1397_v31, %v1130_v18 }
0x1fd3   :  { %v1135_v41 = vsel %vm1134_vm0, %v1397_v31, %v1131_v20 }
0x1fd4   :  { %v1140_v21 = vsel %vm1137_vm1, %v1139_v63, %v1135_v41 }
0x1fd5   :  { %v1142_v22 = vmul.f32 2.0, %v1140_v21  ;;  %v1144_v35 = vmul.f32 %v1140_v21, %v1076_v57 }
0x1fd7   :  { %v1290_v23 = vadd.f32 -1.0, %v1142_v22 }
0x1fd9   :  { %1146 = vrot.lane.b32.xlu2 %v1290_v23, %s1507_s5 }
0x1fe1   :  { %1085 = vrot.lane.b32.xlu2 %v1083_v0, %s1503_s23 }
0x2033   :  { %v1147_v24 = vpop.permute.xlu2 %1146 }
0x2034   :  { %v1149_v3 = vmul.f32 %v1147_v24, %v1140_v21 }
0x2036   :  { %1151 = vrot.lane.b32.xlu0 %v1149_v3, %s1507_s5 }
0x203b   :  { %v1086_v26 = vpop.permute.xlu2 %1085 }
0x203c   :  { %1089 = vst.msk [vmem:[#allocation9] sm:$0xf] %vm1088_vm2, %v1086_v26 }
0x20a8   :  { %v1152_v56 = vpop.permute.xlu0 %1151 }
0x20a9   :  { %v1154_v27 = vadd.f32 %v1152_v56, %v1144_v35 }
0x20ab   :  { %1398 = vtanh.f32 %v1154_v27 }
0x20b1   :  { %v1399_v28 = vpop.eup %1398 }
0x20b2   :  { %1157 = vrot.lane.b32.xlu1 %v1399_v28, %s1507_s5 }
0x2124   :  { %v1158_v29 = vpop.permute.xlu1 %1157 }
0x2125   :  { %v1160_v25 = vmul.f32 %v1158_v29, %v1140_v21 }
0x2127   :  { %v1161_v30 = vpack.c.bf16 %v1160_v25, %v1160_v25 }
0x2129   :  { %1163 = vrot.lane.b32.xlu0 %v1161_v30, %s1503_s23 }
0x219b   :  { %v1164_v32 = vpop.permute.xlu0 %1163 }
0x219c   :  { %1166 = vst.msk [vmem:[#allocation9 + $0x4] sm:$0xf] %vm1088_vm2, %v1164_v32 }
0x219d   :  { %1179 = dma.vmem_to_hbm [thread:$0]  %s1172_s10, 128, %s1174_s13, [#allocation5], %s1503_s23, %s1503_s23, %s1504_s24  }
0x219e   :  { %1500 = dma.done.wait [#allocation5], 128  }
0x219f   :  { %1501 = vsyncadd [#allocation5], 4294967168 }
0x21a0   :  { %1184 = vsyncpa [#allocation4], 1 }
0x21a1   :  { %1185 = vsyncpa [#allocation7], 1 }
0x21a2   :  { %1186 = vsyncpa [#allocation5], 1 }

</bundles_post_ra>
